<compile_context>
chip_gen: v5e
topology: v5e:2x2
jax: 0.10.0
libtpu: 0.0.40
codegen_flags: <defaults>
</compile_context>

<pallas_src>
import jax
import jax.numpy as jnp
from jax.experimental import pallas as pl
from jax.experimental.pallas import tpu as pltpu

# ----------------------------- configuration -------------------------------
B = 2            # batch
IN_CHANS = 4     # input channels
H = W = 16       # spatial size
PATCH = 4        # patch size (conv kernel == stride)
EMBED = 32       # embed dim
NUM_HEADS = 2
HEAD_DIM = EMBED // NUM_HEADS
MLP_RATIO = 4
HIDDEN = EMBED * MLP_RATIO            # 128 (lane-dense MLP path)
HP, WP = H // PATCH, W // PATCH
NPATCH = HP * WP                      # 16 tokens; one window covers the 4x4 grid
PDIM = IN_CHANS * PATCH * PATCH       # flattened patch length = 64
SCALE = HEAD_DIM ** -0.5
EPS = 1e-5


def _num_tensorcores() -> int:
    """Best-effort TensorCore count per chip: 2 on v7x, 1 on v5e/v6e."""
    try:
        kind = jax.devices()[0].device_kind.lower()
    except Exception:
        return 1
    return 2 if "v7" in kind else 1


NUM_TC = _num_tensorcores()
GRID_B = NUM_TC if (NUM_TC > 1 and B % NUM_TC == 0) else 1   # grid steps
BB = B // GRID_B                                             # batches per step
TOKENS = BB * NPATCH                                         # tokens per step

# Rows of the packed small-vector table (each row is 128 lanes wide).
R_PE_B = 0
R_LN0_G, R_LN0_B = 1, 2
R_LN1_G, R_LN1_B = 3, 4
R_QB = 5                         # NUM_HEADS rows (scale folded in)
R_KB = R_QB + NUM_HEADS
R_VB = R_KB + NUM_HEADS
R_PROJ_B = R_VB + NUM_HEADS
R_LN2_G, R_LN2_B = R_PROJ_B + 1, R_PROJ_B + 2
R_FC1_B = R_PROJ_B + 3
R_FC2_B = R_PROJ_B + 4
VEC_ROWS = R_FC2_B + 1           # = 16 for NUM_HEADS = 2


# ------------------------------ kernel helpers ------------------------------
def _layernorm(x, g, b):
    mu = jnp.mean(x, axis=-1, keepdims=True)
    var = jnp.mean((x - mu) ** 2, axis=-1, keepdims=True)
    return (x - mu) * jax.lax.rsqrt(var + EPS) * g + b


def _gelu(x):
    # TODO(synk): tanh approximation; PyTorch's default nn.GELU is erf-based
    # (difference < ~1e-3 in float32 at these magnitudes).
    c = 0.7978845608028654  # sqrt(2/pi)
    return 0.5 * x * (1.0 + jnp.tanh(c * (x + 0.044715 * x * x * x)))


# -------------------------------- the kernel --------------------------------
def encoder_kernel(patches_ref, pe_w_ref, qkv_w_ref, proj_w_ref,
                   fc1_w_ref, fc2_w_ref, vecs_ref, bias_ref, o_ref):
    vecs = vecs_ref[...]                                   # (VEC_ROWS, 128)

    def vec(r, width):                                     # (1, width) row
        return vecs[r:r + 1, :width]

    p = patches_ref[...]                                   # (TOKENS, PDIM)

    # --- patch embedding: Conv2d(k=stride=4) as one matmul, then LayerNorm ---
    x = jnp.dot(p, pe_w_ref[...], preferred_element_type=jnp.float32)
    x = x + vec(R_PE_B, EMBED)
    x = _layernorm(x, vec(R_LN0_G, EMBED), vec(R_LN0_B, EMBED))   # (TOKENS, E)

    # --- Swin block: window multi-head self-attention (single window/batch) --
    shortcut = x
    h = _layernorm(x, vec(R_LN1_G, EMBED), vec(R_LN1_B, EMBED))
    attn = None
    for hi in range(NUM_HEADS):                            # static unroll
        # per-head Q/K/V slabs: leading-axis ref indexing only (no lane slices)
        qh = jnp.dot(h, qkv_w_ref[hi],
                     preferred_element_type=jnp.float32) + vec(R_QB + hi, HEAD_DIM)
        kh = jnp.dot(h, qkv_w_ref[NUM_HEADS + hi],
                     preferred_element_type=jnp.float32) + vec(R_KB + hi, HEAD_DIM)
        vh = jnp.dot(h, qkv_w_ref[2 * NUM_HEADS + hi],
                     preferred_element_type=jnp.float32) + vec(R_VB + hi, HEAD_DIM)
        # scores over the fused token axis (scale already folded into Q);
        # bias is block-diagonal so different batch elements never attend.
        att = jax.lax.dot_general(qh, kh, (((1,), (1,)), ((), ())),
                                  preferred_element_type=jnp.float32)
        att = att + bias_ref[hi]
        att = att - jnp.max(att, axis=-1, keepdims=True)
        pr = jnp.exp(att)
        pr = pr * pl.reciprocal(jnp.sum(pr, axis=-1, keepdims=True), approx=True)
        oh = jnp.dot(pr, vh, preferred_element_type=jnp.float32)
        # fold concat-of-heads into the output projection (per-head slab sum)
        ph = jnp.dot(oh, proj_w_ref[hi], preferred_element_type=jnp.float32)
        attn = ph if attn is None else attn + ph
    x = shortcut + attn + vec(R_PROJ_B, EMBED)

    # --- MLP (HIDDEN = 128 -> lane-dense inner path) -------------------------
    h2 = _layernorm(x, vec(R_LN2_G, EMBED), vec(R_LN2_B, EMBED))
    m = jnp.dot(h2, fc1_w_ref[...], preferred_element_type=jnp.float32)
    m = _gelu(m + vec(R_FC1_B, HIDDEN))
    m = jnp.dot(m, fc2_w_ref[...], preferred_element_type=jnp.float32)
    m = m + vec(R_FC2_B, EMBED)

    o_ref[...] = x + m                                     # (TOKENS, EMBED)


# ------------------------------- the wrapper --------------------------------
def encoder_forward(x_nchw, params):
    b, c, h, w = x_nchw.shape
    assert (b, c, h, w) == (B, IN_CHANS, H, W)

    # unfold NCHW into per-patch vectors ordered (c, ki, kj) to match a
    # flattened PyTorch Conv2d weight [out, in, kh, kw] -> [in*kh*kw, out].
    patches = x_nchw.reshape(b, c, HP, PATCH, WP, PATCH)
    patches = patches.transpose(0, 2, 4, 1, 3, 5).reshape(b * NPATCH, PDIM)

    pe_w, qkv_w_h, proj_w_h, fc1_w, fc2_w, vecs, bias_blk = params

    def full(shape):
        return pl.BlockSpec(shape, lambda g, _n=len(shape): (0,) * _n)

    in_specs = [
        pl.BlockSpec((TOKENS, PDIM), lambda g: (g, 0)),    # patch vectors
        full(pe_w.shape),                                  # patch-embed weight
        full(qkv_w_h.shape),                               # per-head q/k/v slabs
        full(proj_w_h.shape),                              # per-head proj slabs
        full(fc1_w.shape), full(fc2_w.shape),              # MLP weights
        full(vecs.shape),                                  # packed vectors
        full(bias_blk.shape),                              # (masked) rel-pos bias
    ]
    out_spec = pl.BlockSpec((TOKENS, EMBED), lambda g: (g, 0))

    out = pl.pallas_call(
        encoder_kernel,
        out_shape=jax.ShapeDtypeStruct((b * NPATCH, EMBED), jnp.float32),
        grid_spec=pltpu.PrefetchScalarGridSpec(
            num_scalar_prefetch=0,
            grid=(GRID_B,),
            in_specs=in_specs,
            out_specs=out_spec,
        ),
        compiler_params=pltpu.CompilerParams(dimension_semantics=("parallel",)),
    )(patches, *params)
    return out.reshape(b, NPATCH, EMBED)


# ---------------------------- deterministic init ----------------------------
def pack_params(pe_w, pe_b, ln0_g, ln0_b, ln1_g, ln1_b, qkv_w, qkv_b, bias,
                proj_w, proj_b, ln2_g, ln2_b, fc1_w, fc1_b, fc2_w, fc2_b):
    """One-time layout prep (done at init, not per call): per-head weight slabs
    with the softmax scale folded into Q, a single packed vector table, and a
    block-diagonal rel-pos bias over the fused BB*NPATCH token axis."""
    # [E, 3E] -> per-head slabs [3*nH, E, Dh]; fold SCALE into the Q slab.
    w3 = qkv_w.reshape(EMBED, 3, NUM_HEADS, HEAD_DIM)
    qw = w3[:, 0].transpose(1, 0, 2) * SCALE
    kw = w3[:, 1].transpose(1, 0, 2)
    vw = w3[:, 2].transpose(1, 0, 2)
    qkv_w_h = jnp.concatenate([qw, kw, vw], axis=0)        # [3*nH, E, Dh]

    b3 = qkv_b.reshape(3, NUM_HEADS, HEAD_DIM)
    qb, kb, vb = b3[0] * SCALE, b3[1], b3[2]               # [nH, Dh] each

    proj_w_h = proj_w.reshape(NUM_HEADS, HEAD_DIM, EMBED)  # [nH, Dh, E]

    def row(v):
        v = jnp.asarray(v, jnp.float32).reshape(-1)
        return jnp.pad(v, (0, 128 - v.shape[0]))

    rows = [row(pe_b), row(ln0_g), row(ln0_b), row(ln1_g), row(ln1_b)]
    rows += [row(qb[i]) for i in range(NUM_HEADS)]
    rows += [row(kb[i]) for i in range(NUM_HEADS)]
    rows += [row(vb[i]) for i in range(NUM_HEADS)]
    rows += [row(proj_b), row(ln2_g), row(ln2_b), row(fc1_b), row(fc2_b)]
    vecs = jnp.stack(rows, axis=0)                         # (VEC_ROWS, 128)
    assert vecs.shape == (VEC_ROWS, 128)

    # Block-diagonal bias: -1e30 blocks cross-batch attention when BB > 1
    # (exp of the masked scores is exactly 0 after the row-max subtraction).
    if BB == 1:
        bias_blk = bias
    else:
        bias_blk = jnp.full((NUM_HEADS, TOKENS, TOKENS), -1e30, jnp.float32)
        for bi in range(BB):
            s = bi * NPATCH
            bias_blk = bias_blk.at[:, s:s + NPATCH, s:s + NPATCH].set(bias)

    return (pe_w, qkv_w_h, proj_w_h, fc1_w, fc2_w, vecs, bias_blk)


def init_params(key):
    ks = jax.random.split(key, 6)

    def tn(k, shape):
        return jax.random.truncated_normal(k, -2.0, 2.0, shape, jnp.float32) * 0.02

    pe_w = tn(ks[0], (PDIM, EMBED))
    pe_b = jnp.zeros((EMBED,), jnp.float32)
    ln0_g, ln0_b = jnp.ones((EMBED,), jnp.float32), jnp.zeros((EMBED,), jnp.float32)
    ln1_g, ln1_b = jnp.ones((EMBED,), jnp.float32), jnp.zeros((EMBED,), jnp.float32)
    qkv_w = tn(ks[1], (EMBED, 3 * EMBED))
    qkv_b = jnp.zeros((3 * EMBED,), jnp.float32)

    # Swin relative position bias, gathered from a (2*Wh-1)*(2*Ww-1) table.
    table = tn(ks[2], ((2 * HP - 1) * (2 * WP - 1), NUM_HEADS))
    coords = jnp.stack(jnp.meshgrid(jnp.arange(HP), jnp.arange(WP), indexing="ij"))
    cf = coords.reshape(2, -1)
    rel = (cf[:, :, None] - cf[:, None, :]).transpose(1, 2, 0)
    rel = rel + jnp.array([HP - 1, WP - 1])
    idx = rel[..., 0] * (2 * WP - 1) + rel[..., 1]
    bias = table[idx.reshape(-1)].reshape(NPATCH, NPATCH, NUM_HEADS)
    bias = jnp.asarray(bias.transpose(2, 0, 1), jnp.float32)   # [nH, L, L]

    proj_w = tn(ks[3], (EMBED, EMBED))
    proj_b = jnp.zeros((EMBED,), jnp.float32)
    ln2_g, ln2_b = jnp.ones((EMBED,), jnp.float32), jnp.zeros((EMBED,), jnp.float32)
    fc1_w = tn(ks[4], (EMBED, HIDDEN))
    fc1_b = jnp.zeros((HIDDEN,), jnp.float32)
    fc2_w = tn(ks[5], (HIDDEN, EMBED))
    fc2_b = jnp.zeros((EMBED,), jnp.float32)

    return pack_params(pe_w, pe_b, ln0_g, ln0_b, ln1_g, ln1_b, qkv_w, qkv_b,
                       bias, proj_w, proj_b, ln2_g, ln2_b,
                       fc1_w, fc1_b, fc2_w, fc2_b)


if __name__ == "__main__":
    key = jax.random.PRNGKey(0)
    kx, kp = jax.random.split(key)
    x = jax.random.normal(kx, (B, IN_CHANS, H, W), jnp.float32)   # NCHW, as PyTorch
    params = init_params(kp)
    out = encoder_forward(x, params)
    jax.block_until_ready(out)
    assert out.shape == (B, NPATCH, EMBED)
    print("KERNEL_OK")
</pallas_src>

<mosaic_0001>
module attributes {stable_mosaic.version = 11 : i64} {
  func.func @encoder_kernel(%arg0: i32, %arg1: memref<32x64xf32, #tpu.memory_space<vmem>>, %arg2: memref<64x32xf32, #tpu.memory_space<vmem>>, %arg3: memref<6x32x16xf32, #tpu.memory_space<vmem>>, %arg4: memref<2x16x32xf32, #tpu.memory_space<vmem>>, %arg5: memref<32x128xf32, #tpu.memory_space<vmem>>, %arg6: memref<128x32xf32, #tpu.memory_space<vmem>>, %arg7: memref<16x128xf32, #tpu.memory_space<vmem>>, %arg8: memref<2x32x32xf32, #tpu.memory_space<vmem>>, %arg9: memref<32x32xf32, #tpu.memory_space<vmem>>) attributes {dimension_semantics = [#tpu.dimension_semantics<parallel>], iteration_bounds = array<i64: 1>, scalar_prefetch = 0 : i64, scratch_operands = 0 : i64, tpu.core_type = #tpu.core_type<tc>, window_params = [{transform_indices = @transform_0, window_bounds = array<i64: 32, 64>}, {pipeline_mode = #tpu.pipeline_mode<synchronous>, transform_indices = @transform_1, window_bounds = array<i64: 64, 32>}, {pipeline_mode = #tpu.pipeline_mode<synchronous>, transform_indices = @transform_2, window_bounds = array<i64: 6, 32, 16>}, {pipeline_mode = #tpu.pipeline_mode<synchronous>, transform_indices = @transform_3, window_bounds = array<i64: 2, 16, 32>}, {pipeline_mode = #tpu.pipeline_mode<synchronous>, transform_indices = @transform_4, window_bounds = array<i64: 32, 128>}, {pipeline_mode = #tpu.pipeline_mode<synchronous>, transform_indices = @transform_5, window_bounds = array<i64: 128, 32>}, {pipeline_mode = #tpu.pipeline_mode<synchronous>, transform_indices = @transform_6, window_bounds = array<i64: 16, 128>}, {pipeline_mode = #tpu.pipeline_mode<synchronous>, transform_indices = @transform_7, window_bounds = array<i64: 2, 32, 32>}, {transform_indices = @transform_8, window_bounds = array<i64: 32, 32>}]} {
    %c0 = arith.constant 0 : index
    %c0_0 = arith.constant 0 : index
    %0 = vector.load %arg7[%c0, %c0_0] : memref<16x128xf32, #tpu.memory_space<vmem>>, vector<16x128xf32>
    %c0_1 = arith.constant 0 : index
    %c0_2 = arith.constant 0 : index
    %1 = vector.load %arg1[%c0_1, %c0_2] : memref<32x64xf32, #tpu.memory_space<vmem>>, vector<32x64xf32>
    %c0_3 = arith.constant 0 : index
    %c0_4 = arith.constant 0 : index
    %2 = vector.load %arg2[%c0_3, %c0_4] : memref<64x32xf32, #tpu.memory_space<vmem>>, vector<64x32xf32>
    %cst = arith.constant dense<0.000000e+00> : vector<32x32xf32>
    %3 = tpu.matmul %1, %2, %cst {dimension_numbers = #tpu.dot_dimension_numbers<[1], [0], [0], [1], [0, 0, 1, 1], [], []>} : vector<32x64xf32>, vector<64x32xf32>, vector<32x32xf32> -> vector<32x32xf32>
    %4 = vector.extract_strided_slice %0 {offsets = [0, 0], sizes = [1, 32], strides = [1, 1]} : vector<16x128xf32> to vector<1x32xf32>
    %5 = vector.broadcast %4 : vector<1x32xf32> to vector<32x32xf32>
    %6 = arith.addf %3, %5 : vector<32x32xf32>
    %7 = vector.extract_strided_slice %0 {offsets = [1, 0], sizes = [1, 32], strides = [1, 1]} : vector<16x128xf32> to vector<1x32xf32>
    %8 = vector.extract_strided_slice %0 {offsets = [2, 0], sizes = [1, 32], strides = [1, 1]} : vector<16x128xf32> to vector<1x32xf32>
    %cst_5 = arith.constant dense<0.000000e+00> : vector<32xf32>
    %9 = vector.multi_reduction <add>, %6, %cst_5 [1] : vector<32x32xf32> to vector<32xf32>
    %10 = vector.shape_cast %9 : vector<32xf32> to vector<32x1xf32>
    %cst_6 = arith.constant 3.200000e+01 : f32
    %11 = vector.broadcast %cst_6 : f32 to vector<32x1xf32>
    %12 = arith.divf %10, %11 : vector<32x1xf32>
    %13 = vector.broadcast %12 : vector<32x1xf32> to vector<32x32xf32>
    %14 = arith.subf %6, %13 : vector<32x32xf32>
    %15 = arith.mulf %14, %14 : vector<32x32xf32>
    %cst_7 = arith.constant dense<0.000000e+00> : vector<32xf32>
    %16 = vector.multi_reduction <add>, %15, %cst_7 [1] : vector<32x32xf32> to vector<32xf32>
    %17 = vector.shape_cast %16 : vector<32xf32> to vector<32x1xf32>
    %cst_8 = arith.constant 3.200000e+01 : f32
    %18 = vector.broadcast %cst_8 : f32 to vector<32x1xf32>
    %19 = arith.divf %17, %18 : vector<32x1xf32>
    %20 = vector.broadcast %12 : vector<32x1xf32> to vector<32x32xf32>
    %21 = arith.subf %6, %20 : vector<32x32xf32>
    %cst_9 = arith.constant 9.99999974E-6 : f32
    %22 = vector.broadcast %cst_9 : f32 to vector<32x1xf32>
    %23 = arith.addf %19, %22 : vector<32x1xf32>
    %24 = math.rsqrt %23 : vector<32x1xf32>
    %25 = vector.broadcast %24 : vector<32x1xf32> to vector<32x32xf32>
    %26 = arith.mulf %21, %25 : vector<32x32xf32>
    %27 = vector.broadcast %7 : vector<1x32xf32> to vector<32x32xf32>
    %28 = arith.mulf %26, %27 : vector<32x32xf32>
    %29 = vector.broadcast %8 : vector<1x32xf32> to vector<32x32xf32>
    %30 = arith.addf %28, %29 : vector<32x32xf32>
    %31 = vector.extract_strided_slice %0 {offsets = [3, 0], sizes = [1, 32], strides = [1, 1]} : vector<16x128xf32> to vector<1x32xf32>
    %32 = vector.extract_strided_slice %0 {offsets = [4, 0], sizes = [1, 32], strides = [1, 1]} : vector<16x128xf32> to vector<1x32xf32>
    %cst_10 = arith.constant dense<0.000000e+00> : vector<32xf32>
    %33 = vector.multi_reduction <add>, %30, %cst_10 [1] : vector<32x32xf32> to vector<32xf32>
    %34 = vector.shape_cast %33 : vector<32xf32> to vector<32x1xf32>
    %cst_11 = arith.constant 3.200000e+01 : f32
    %35 = vector.broadcast %cst_11 : f32 to vector<32x1xf32>
    %36 = arith.divf %34, %35 : vector<32x1xf32>
    %37 = vector.broadcast %36 : vector<32x1xf32> to vector<32x32xf32>
    %38 = arith.subf %30, %37 : vector<32x32xf32>
    %39 = arith.mulf %38, %38 : vector<32x32xf32>
    %cst_12 = arith.constant dense<0.000000e+00> : vector<32xf32>
    %40 = vector.multi_reduction <add>, %39, %cst_12 [1] : vector<32x32xf32> to vector<32xf32>
    %41 = vector.shape_cast %40 : vector<32xf32> to vector<32x1xf32>
    %cst_13 = arith.constant 3.200000e+01 : f32
    %42 = vector.broadcast %cst_13 : f32 to vector<32x1xf32>
    %43 = arith.divf %41, %42 : vector<32x1xf32>
    %44 = vector.broadcast %36 : vector<32x1xf32> to vector<32x32xf32>
    %45 = arith.subf %30, %44 : vector<32x32xf32>
    %cst_14 = arith.constant 9.99999974E-6 : f32
    %46 = vector.broadcast %cst_14 : f32 to vector<32x1xf32>
    %47 = arith.addf %43, %46 : vector<32x1xf32>
    %48 = math.rsqrt %47 : vector<32x1xf32>
    %49 = vector.broadcast %48 : vector<32x1xf32> to vector<32x32xf32>
    %50 = arith.mulf %45, %49 : vector<32x32xf32>
    %51 = vector.broadcast %31 : vector<1x32xf32> to vector<32x32xf32>
    %52 = arith.mulf %50, %51 : vector<32x32xf32>
    %53 = vector.broadcast %32 : vector<1x32xf32> to vector<32x32xf32>
    %54 = arith.addf %52, %53 : vector<32x32xf32>
    %c0_15 = arith.constant 0 : index
    %c0_16 = arith.constant 0 : index
    %c0_17 = arith.constant 0 : index
    %55 = vector.load %arg3[%c0_15, %c0_16, %c0_17] : memref<6x32x16xf32, #tpu.memory_space<vmem>>, vector<1x32x16xf32>
    %56 = vector.shape_cast %55 : vector<1x32x16xf32> to vector<32x16xf32>
    %cst_18 = arith.constant dense<0.000000e+00> : vector<32x16xf32>
    %57 = tpu.matmul %54, %56, %cst_18 {dimension_numbers = #tpu.dot_dimension_numbers<[1], [0], [0], [1], [0, 0, 1, 1], [], []>} : vector<32x32xf32>, vector<32x16xf32>, vector<32x16xf32> -> vector<32x16xf32>
    %58 = vector.extract_strided_slice %0 {offsets = [5, 0], sizes = [1, 16], strides = [1, 1]} : vector<16x128xf32> to vector<1x16xf32>
    %59 = vector.broadcast %58 : vector<1x16xf32> to vector<32x16xf32>
    %60 = arith.addf %57, %59 : vector<32x16xf32>
    %c2 = arith.constant 2 : index
    %c0_19 = arith.constant 0 : index
    %c0_20 = arith.constant 0 : index
    %61 = vector.load %arg3[%c2, %c0_19, %c0_20] : memref<6x32x16xf32, #tpu.memory_space<vmem>>, vector<1x32x16xf32>
    %62 = vector.shape_cast %61 : vector<1x32x16xf32> to vector<32x16xf32>
    %cst_21 = arith.constant dense<0.000000e+00> : vector<32x16xf32>
    %63 = tpu.matmul %54, %62, %cst_21 {dimension_numbers = #tpu.dot_dimension_numbers<[1], [0], [0], [1], [0, 0, 1, 1], [], []>} : vector<32x32xf32>, vector<32x16xf32>, vector<32x16xf32> -> vector<32x16xf32>
    %64 = vector.extract_strided_slice %0 {offsets = [7, 0], sizes = [1, 16], strides = [1, 1]} : vector<16x128xf32> to vector<1x16xf32>
    %65 = vector.broadcast %64 : vector<1x16xf32> to vector<32x16xf32>
    %66 = arith.addf %63, %65 : vector<32x16xf32>
    %c4 = arith.constant 4 : index
    %c0_22 = arith.constant 0 : index
    %c0_23 = arith.constant 0 : index
    %67 = vector.load %arg3[%c4, %c0_22, %c0_23] : memref<6x32x16xf32, #tpu.memory_space<vmem>>, vector<1x32x16xf32>
    %68 = vector.shape_cast %67 : vector<1x32x16xf32> to vector<32x16xf32>
    %cst_24 = arith.constant dense<0.000000e+00> : vector<32x16xf32>
    %69 = tpu.matmul %54, %68, %cst_24 {dimension_numbers = #tpu.dot_dimension_numbers<[1], [0], [0], [1], [0, 0, 1, 1], [], []>} : vector<32x32xf32>, vector<32x16xf32>, vector<32x16xf32> -> vector<32x16xf32>
    %70 = vector.extract_strided_slice %0 {offsets = [9, 0], sizes = [1, 16], strides = [1, 1]} : vector<16x128xf32> to vector<1x16xf32>
    %71 = vector.broadcast %70 : vector<1x16xf32> to vector<32x16xf32>
    %72 = arith.addf %69, %71 : vector<32x16xf32>
    %cst_25 = arith.constant dense<0.000000e+00> : vector<32x32xf32>
    %73 = tpu.matmul %60, %66, %cst_25 {dimension_numbers = #tpu.dot_dimension_numbers<[1], [1], [0], [0], [0, 0, 1, 0], [], []>} : vector<32x16xf32>, vector<32x16xf32>, vector<32x32xf32> -> vector<32x32xf32>
    %c0_26 = arith.constant 0 : index
    %c0_27 = arith.constant 0 : index
    %c0_28 = arith.constant 0 : index
    %74 = vector.load %arg8[%c0_26, %c0_27, %c0_28] : memref<2x32x32xf32, #tpu.memory_space<vmem>>, vector<1x32x32xf32>
    %75 = vector.shape_cast %74 : vector<1x32x32xf32> to vector<32x32xf32>
    %76 = arith.addf %73, %75 : vector<32x32xf32>
    %cst_29 = arith.constant dense<0xFF800000> : vector<32xf32>
    %77 = vector.multi_reduction <maximumf>, %76, %cst_29 [1] : vector<32x32xf32> to vector<32xf32>
    %78 = vector.shape_cast %77 : vector<32xf32> to vector<32x1xf32>
    %79 = vector.broadcast %78 : vector<32x1xf32> to vector<32x32xf32>
    %80 = arith.subf %76, %79 : vector<32x32xf32>
    %81 = math.exp %80 : vector<32x32xf32>
    %cst_30 = arith.constant dense<0.000000e+00> : vector<32xf32>
    %82 = vector.multi_reduction <add>, %81, %cst_30 [1] : vector<32x32xf32> to vector<32xf32>
    %83 = vector.shape_cast %82 : vector<32xf32> to vector<32x1xf32>
    %84 = tpu.reciprocal %83 {approx = true} : vector<32x1xf32> -> vector<32x1xf32>
    %85 = vector.broadcast %84 : vector<32x1xf32> to vector<32x32xf32>
    %86 = arith.mulf %81, %85 : vector<32x32xf32>
    %cst_31 = arith.constant dense<0.000000e+00> : vector<32x16xf32>
    %87 = tpu.matmul %86, %72, %cst_31 {dimension_numbers = #tpu.dot_dimension_numbers<[1], [0], [0], [1], [0, 0, 1, 1], [], []>} : vector<32x32xf32>, vector<32x16xf32>, vector<32x16xf32> -> vector<32x16xf32>
    %c0_32 = arith.constant 0 : index
    %c0_33 = arith.constant 0 : index
    %c0_34 = arith.constant 0 : index
    %88 = vector.load %arg4[%c0_32, %c0_33, %c0_34] : memref<2x16x32xf32, #tpu.memory_space<vmem>>, vector<1x16x32xf32>
    %89 = vector.shape_cast %88 : vector<1x16x32xf32> to vector<16x32xf32>
    %cst_35 = arith.constant dense<0.000000e+00> : vector<32x32xf32>
    %90 = tpu.matmul %87, %89, %cst_35 {dimension_numbers = #tpu.dot_dimension_numbers<[1], [0], [0], [1], [0, 0, 1, 1], [], []>} : vector<32x16xf32>, vector<16x32xf32>, vector<32x32xf32> -> vector<32x32xf32>
    %c1 = arith.constant 1 : index
    %c0_36 = arith.constant 0 : index
    %c0_37 = arith.constant 0 : index
    %91 = vector.load %arg3[%c1, %c0_36, %c0_37] : memref<6x32x16xf32, #tpu.memory_space<vmem>>, vector<1x32x16xf32>
    %92 = vector.shape_cast %91 : vector<1x32x16xf32> to vector<32x16xf32>
    %cst_38 = arith.constant dense<0.000000e+00> : vector<32x16xf32>
    %93 = tpu.matmul %54, %92, %cst_38 {dimension_numbers = #tpu.dot_dimension_numbers<[1], [0], [0], [1], [0, 0, 1, 1], [], []>} : vector<32x32xf32>, vector<32x16xf32>, vector<32x16xf32> -> vector<32x16xf32>
    %94 = vector.extract_strided_slice %0 {offsets = [6, 0], sizes = [1, 16], strides = [1, 1]} : vector<16x128xf32> to vector<1x16xf32>
    %95 = vector.broadcast %94 : vector<1x16xf32> to vector<32x16xf32>
    %96 = arith.addf %93, %95 : vector<32x16xf32>
    %c3 = arith.constant 3 : index
    %c0_39 = arith.constant 0 : index
    %c0_40 = arith.constant 0 : index
    %97 = vector.load %arg3[%c3, %c0_39, %c0_40] : memref<6x32x16xf32, #tpu.memory_space<vmem>>, vector<1x32x16xf32>
    %98 = vector.shape_cast %97 : vector<1x32x16xf32> to vector<32x16xf32>
    %cst_41 = arith.constant dense<0.000000e+00> : vector<32x16xf32>
    %99 = tpu.matmul %54, %98, %cst_41 {dimension_numbers = #tpu.dot_dimension_numbers<[1], [0], [0], [1], [0, 0, 1, 1], [], []>} : vector<32x32xf32>, vector<32x16xf32>, vector<32x16xf32> -> vector<32x16xf32>
    %100 = vector.extract_strided_slice %0 {offsets = [8, 0], sizes = [1, 16], strides = [1, 1]} : vector<16x128xf32> to vector<1x16xf32>
    %101 = vector.broadcast %100 : vector<1x16xf32> to vector<32x16xf32>
    %102 = arith.addf %99, %101 : vector<32x16xf32>
    %c5 = arith.constant 5 : index
    %c0_42 = arith.constant 0 : index
    %c0_43 = arith.constant 0 : index
    %103 = vector.load %arg3[%c5, %c0_42, %c0_43] : memref<6x32x16xf32, #tpu.memory_space<vmem>>, vector<1x32x16xf32>
    %104 = vector.shape_cast %103 : vector<1x32x16xf32> to vector<32x16xf32>
    %cst_44 = arith.constant dense<0.000000e+00> : vector<32x16xf32>
    %105 = tpu.matmul %54, %104, %cst_44 {dimension_numbers = #tpu.dot_dimension_numbers<[1], [0], [0], [1], [0, 0, 1, 1], [], []>} : vector<32x32xf32>, vector<32x16xf32>, vector<32x16xf32> -> vector<32x16xf32>
    %106 = vector.extract_strided_slice %0 {offsets = [10, 0], sizes = [1, 16], strides = [1, 1]} : vector<16x128xf32> to vector<1x16xf32>
    %107 = vector.broadcast %106 : vector<1x16xf32> to vector<32x16xf32>
    %108 = arith.addf %105, %107 : vector<32x16xf32>
    %cst_45 = arith.constant dense<0.000000e+00> : vector<32x32xf32>
    %109 = tpu.matmul %96, %102, %cst_45 {dimension_numbers = #tpu.dot_dimension_numbers<[1], [1], [0], [0], [0, 0, 1, 0], [], []>} : vector<32x16xf32>, vector<32x16xf32>, vector<32x32xf32> -> vector<32x32xf32>
    %c1_46 = arith.constant 1 : index
    %c0_47 = arith.constant 0 : index
    %c0_48 = arith.constant 0 : index
    %110 = vector.load %arg8[%c1_46, %c0_47, %c0_48] : memref<2x32x32xf32, #tpu.memory_space<vmem>>, vector<1x32x32xf32>
    %111 = vector.shape_cast %110 : vector<1x32x32xf32> to vector<32x32xf32>
    %112 = arith.addf %109, %111 : vector<32x32xf32>
    %cst_49 = arith.constant dense<0xFF800000> : vector<32xf32>
    %113 = vector.multi_reduction <maximumf>, %112, %cst_49 [1] : vector<32x32xf32> to vector<32xf32>
    %114 = vector.shape_cast %113 : vector<32xf32> to vector<32x1xf32>
    %115 = vector.broadcast %114 : vector<32x1xf32> to vector<32x32xf32>
    %116 = arith.subf %112, %115 : vector<32x32xf32>
    %117 = math.exp %116 : vector<32x32xf32>
    %cst_50 = arith.constant dense<0.000000e+00> : vector<32xf32>
    %118 = vector.multi_reduction <add>, %117, %cst_50 [1] : vector<32x32xf32> to vector<32xf32>
    %119 = vector.shape_cast %118 : vector<32xf32> to vector<32x1xf32>
    %120 = tpu.reciprocal %119 {approx = true} : vector<32x1xf32> -> vector<32x1xf32>
    %121 = vector.broadcast %120 : vector<32x1xf32> to vector<32x32xf32>
    %122 = arith.mulf %117, %121 : vector<32x32xf32>
    %cst_51 = arith.constant dense<0.000000e+00> : vector<32x16xf32>
    %123 = tpu.matmul %122, %108, %cst_51 {dimension_numbers = #tpu.dot_dimension_numbers<[1], [0], [0], [1], [0, 0, 1, 1], [], []>} : vector<32x32xf32>, vector<32x16xf32>, vector<32x16xf32> -> vector<32x16xf32>
    %c1_52 = arith.constant 1 : index
    %c0_53 = arith.constant 0 : index
    %c0_54 = arith.constant 0 : index
    %124 = vector.load %arg4[%c1_52, %c0_53, %c0_54] : memref<2x16x32xf32, #tpu.memory_space<vmem>>, vector<1x16x32xf32>
    %125 = vector.shape_cast %124 : vector<1x16x32xf32> to vector<16x32xf32>
    %cst_55 = arith.constant dense<0.000000e+00> : vector<32x32xf32>
    %126 = tpu.matmul %123, %125, %cst_55 {dimension_numbers = #tpu.dot_dimension_numbers<[1], [0], [0], [1], [0, 0, 1, 1], [], []>} : vector<32x16xf32>, vector<16x32xf32>, vector<32x32xf32> -> vector<32x32xf32>
    %127 = arith.addf %90, %126 : vector<32x32xf32>
    %128 = arith.addf %30, %127 : vector<32x32xf32>
    %129 = vector.extract_strided_slice %0 {offsets = [11, 0], sizes = [1, 32], strides = [1, 1]} : vector<16x128xf32> to vector<1x32xf32>
    %130 = vector.broadcast %129 : vector<1x32xf32> to vector<32x32xf32>
    %131 = arith.addf %128, %130 : vector<32x32xf32>
    %132 = vector.extract_strided_slice %0 {offsets = [12, 0], sizes = [1, 32], strides = [1, 1]} : vector<16x128xf32> to vector<1x32xf32>
    %133 = vector.extract_strided_slice %0 {offsets = [13, 0], sizes = [1, 32], strides = [1, 1]} : vector<16x128xf32> to vector<1x32xf32>
    %cst_56 = arith.constant dense<0.000000e+00> : vector<32xf32>
    %134 = vector.multi_reduction <add>, %131, %cst_56 [1] : vector<32x32xf32> to vector<32xf32>
    %135 = vector.shape_cast %134 : vector<32xf32> to vector<32x1xf32>
    %cst_57 = arith.constant 3.200000e+01 : f32
    %136 = vector.broadcast %cst_57 : f32 to vector<32x1xf32>
    %137 = arith.divf %135, %136 : vector<32x1xf32>
    %138 = vector.broadcast %137 : vector<32x1xf32> to vector<32x32xf32>
    %139 = arith.subf %131, %138 : vector<32x32xf32>
    %140 = arith.mulf %139, %139 : vector<32x32xf32>
    %cst_58 = arith.constant dense<0.000000e+00> : vector<32xf32>
    %141 = vector.multi_reduction <add>, %140, %cst_58 [1] : vector<32x32xf32> to vector<32xf32>
    %142 = vector.shape_cast %141 : vector<32xf32> to vector<32x1xf32>
    %cst_59 = arith.constant 3.200000e+01 : f32
    %143 = vector.broadcast %cst_59 : f32 to vector<32x1xf32>
    %144 = arith.divf %142, %143 : vector<32x1xf32>
    %145 = vector.broadcast %137 : vector<32x1xf32> to vector<32x32xf32>
    %146 = arith.subf %131, %145 : vector<32x32xf32>
    %cst_60 = arith.constant 9.99999974E-6 : f32
    %147 = vector.broadcast %cst_60 : f32 to vector<32x1xf32>
    %148 = arith.addf %144, %147 : vector<32x1xf32>
    %149 = math.rsqrt %148 : vector<32x1xf32>
    %150 = vector.broadcast %149 : vector<32x1xf32> to vector<32x32xf32>
    %151 = arith.mulf %146, %150 : vector<32x32xf32>
    %152 = vector.broadcast %132 : vector<1x32xf32> to vector<32x32xf32>
    %153 = arith.mulf %151, %152 : vector<32x32xf32>
    %154 = vector.broadcast %133 : vector<1x32xf32> to vector<32x32xf32>
    %155 = arith.addf %153, %154 : vector<32x32xf32>
    %c0_61 = arith.constant 0 : index
    %c0_62 = arith.constant 0 : index
    %156 = vector.load %arg5[%c0_61, %c0_62] : memref<32x128xf32, #tpu.memory_space<vmem>>, vector<32x128xf32>
    %cst_63 = arith.constant dense<0.000000e+00> : vector<32x128xf32>
    %157 = tpu.matmul %155, %156, %cst_63 {dimension_numbers = #tpu.dot_dimension_numbers<[1], [0], [0], [1], [0, 0, 1, 1], [], []>} : vector<32x32xf32>, vector<32x128xf32>, vector<32x128xf32> -> vector<32x128xf32>
    %158 = vector.extract_strided_slice %0 {offsets = [14, 0], sizes = [1, 128], strides = [1, 1]} : vector<16x128xf32> to vector<1x128xf32>
    %159 = vector.broadcast %158 : vector<1x128xf32> to vector<32x128xf32>
    %160 = arith.addf %157, %159 : vector<32x128xf32>
    %cst_64 = arith.constant 5.000000e-01 : f32
    %161 = vector.broadcast %cst_64 : f32 to vector<32x128xf32>
    %162 = arith.mulf %161, %160 : vector<32x128xf32>
    %cst_65 = arith.constant 4.471500e-02 : f32
    %163 = vector.broadcast %cst_65 : f32 to vector<32x128xf32>
    %164 = arith.mulf %163, %160 : vector<32x128xf32>
    %165 = arith.mulf %164, %160 : vector<32x128xf32>
    %166 = arith.mulf %165, %160 : vector<32x128xf32>
    %167 = arith.addf %160, %166 : vector<32x128xf32>
    %cst_66 = arith.constant 0.797884583 : f32
    %168 = vector.broadcast %cst_66 : f32 to vector<32x128xf32>
    %169 = arith.mulf %168, %167 : vector<32x128xf32>
    %170 = math.tanh %169 : vector<32x128xf32>
    %cst_67 = arith.constant 1.000000e+00 : f32
    %171 = vector.broadcast %cst_67 : f32 to vector<32x128xf32>
    %172 = arith.addf %171, %170 : vector<32x128xf32>
    %173 = arith.mulf %162, %172 : vector<32x128xf32>
    %c0_68 = arith.constant 0 : index
    %c0_69 = arith.constant 0 : index
    %174 = vector.load %arg6[%c0_68, %c0_69] : memref<128x32xf32, #tpu.memory_space<vmem>>, vector<128x32xf32>
    %cst_70 = arith.constant dense<0.000000e+00> : vector<32x32xf32>
    %175 = tpu.matmul %173, %174, %cst_70 {dimension_numbers = #tpu.dot_dimension_numbers<[1], [0], [0], [1], [0, 0, 1, 1], [], []>} : vector<32x128xf32>, vector<128x32xf32>, vector<32x32xf32> -> vector<32x32xf32>
    %176 = vector.extract_strided_slice %0 {offsets = [15, 0], sizes = [1, 32], strides = [1, 1]} : vector<16x128xf32> to vector<1x32xf32>
    %177 = vector.broadcast %176 : vector<1x32xf32> to vector<32x32xf32>
    %178 = arith.addf %175, %177 : vector<32x32xf32>
    %179 = arith.addf %131, %178 : vector<32x32xf32>
    %c0_71 = arith.constant 0 : index
    %c0_72 = arith.constant 0 : index
    %180 = vector.load %arg9[%c0_71, %c0_72] : memref<32x32xf32, #tpu.memory_space<vmem>>, vector<32x32xf32>
    tpu.vector_store %arg9[%c0_71, %c0_72], %179 {strides = array<i32>} : memref<32x32xf32, #tpu.memory_space<vmem>>, vector<32x32xf32>,
    return
  }
  func.func @transform_0(%arg0: i32) -> (i32, i32) {
    %c0_i32 = arith.constant 0 : i32
    %c0_i32_0 = arith.constant 0 : i32
    return %arg0, %c0_i32 : i32, i32
  }
  func.func @transform_1(%arg0: i32) -> (i32, i32) {
    %c0_i32 = arith.constant 0 : i32
    %c0_i32_0 = arith.constant 0 : i32
    %c0_i32_1 = arith.constant 0 : i32
    return %c0_i32, %c0_i32_0 : i32, i32
  }
  func.func @transform_2(%arg0: i32) -> (i32, i32, i32) {
    %c0_i32 = arith.constant 0 : i32
    %c0_i32_0 = arith.constant 0 : i32
    %c0_i32_1 = arith.constant 0 : i32
    %c0_i32_2 = arith.constant 0 : i32
    return %c0_i32, %c0_i32_0, %c0_i32_1 : i32, i32, i32
  }
  func.func @transform_3(%arg0: i32) -> (i32, i32, i32) {
    %c0_i32 = arith.constant 0 : i32
    %c0_i32_0 = arith.constant 0 : i32
    %c0_i32_1 = arith.constant 0 : i32
    %c0_i32_2 = arith.constant 0 : i32
    return %c0_i32, %c0_i32_0, %c0_i32_1 : i32, i32, i32
  }
  func.func @transform_4(%arg0: i32) -> (i32, i32) {
    %c0_i32 = arith.constant 0 : i32
    %c0_i32_0 = arith.constant 0 : i32
    %c0_i32_1 = arith.constant 0 : i32
    return %c0_i32, %c0_i32_0 : i32, i32
  }
  func.func @transform_5(%arg0: i32) -> (i32, i32) {
    %c0_i32 = arith.constant 0 : i32
    %c0_i32_0 = arith.constant 0 : i32
    %c0_i32_1 = arith.constant 0 : i32
    return %c0_i32, %c0_i32_0 : i32, i32
  }
  func.func @transform_6(%arg0: i32) -> (i32, i32) {
    %c0_i32 = arith.constant 0 : i32
    %c0_i32_0 = arith.constant 0 : i32
    %c0_i32_1 = arith.constant 0 : i32
    return %c0_i32, %c0_i32_0 : i32, i32
  }
  func.func @transform_7(%arg0: i32) -> (i32, i32, i32) {
    %c0_i32 = arith.constant 0 : i32
    %c0_i32_0 = arith.constant 0 : i32
    %c0_i32_1 = arith.constant 0 : i32
    %c0_i32_2 = arith.constant 0 : i32
    return %c0_i32, %c0_i32_0, %c0_i32_1 : i32, i32, i32
  }
  func.func @transform_8(%arg0: i32) -> (i32, i32) {
    %c0_i32 = arith.constant 0 : i32
    %c0_i32_0 = arith.constant 0 : i32
    return %arg0, %c0_i32 : i32, i32
  }
}

</mosaic_0001>

<bundles_post_ra>
// kernel: tpu_custom_call.1
= control target key start
LH: loop header
LB: loop body
LE: loop exit
PB: predicated region body
PF: predicated region fallthrough
CT: control target
= control target key end

     0   :  { %s1871_s0 = inlined_call_operand.vmem [shape: f32[32,64], index: 0, kind: input, shape index: {}]   ;;  %s1872_s1 = inlined_call_operand.vmem [shape: f32[64,32], index: 1, kind: input, shape index: {}]   ;;  %s1873_s2 = inlined_call_operand.vmem [shape: f32[6,32,16], index: 2, kind: input, shape index: {}]   ;;  %s1874_s3 = inlined_call_operand.vmem [shape: f32[2,16,32], index: 3, kind: input, shape index: {}]   ;;  %s1875_s4 = inlined_call_operand.vmem [shape: f32[32,128], index: 4, kind: input, shape index: {}]   ;;  %s1876_s5 = inlined_call_operand.vmem [shape: f32[128,32], index: 5, kind: input, shape index: {}]   ;;  %s1877_s6 = inlined_call_operand.vmem [shape: f32[16,128], index: 6, kind: input, shape index: {}]   ;;  %s1878_s7 = inlined_call_operand.vmem [shape: f32[2,32,32], index: 7, kind: input, shape index: {}]   ;;  %s1879_s8 = inlined_call_operand.hbm [shape: f32[32,32], index: 8, kind: output, shape index: {}]  }
   0x1   :  { %v43_v0 = vld [vmem:[%s1872_s1 + $0x38] sm:$0xff]  ;;  %v42_v1 = vld [vmem:[%s1872_s1 + $0x30] sm:$0xff]  ;;  %v41_v2 = vld [vmem:[%s1872_s1 + $0x28] sm:$0xff] }
   0x2   :  { %66 = vmatpush.msra.mxu0 %v43_v0  ;;  %v40_v3 = vld [vmem:[%s1872_s1 + $0x20] sm:$0xff] }
   0x4   :  { %67 = vmatpush.msra.mxu0 %v42_v1 }
   0x5   :  { %13 = vsyncpa [#allocation3], 0  ;;  %v39_v4 = vld [vmem:[%s1872_s1 + $0x18] sm:$0xff]  ;;  %v38_v5 = vld [vmem:[%s1872_s1 + $0x10] sm:$0xff]  ;;  %vm45_vm0 = vcmask 523264   ;;  %vm87_vm1 = vcmask 261120  }
   0x6   :  { %68 = vmatpush.msra.mxu0 %v41_v2  ;;  %v37_v6 = vld [vmem:[%s1872_s1 + $0x8] sm:$0xff]  ;;  %v36_v7 = vld [vmem:[%s1872_s1] sm:$0xff]  ;;  %v34_v10 = vld [vmem:[%s1871_s0 + $0x10] sm:$0xff]  ;;  %v1336_v26 = vmov 32.0   ;;  %s1134_s16 = sshll.u32 %s1879_s8, 4  ;;  %s1338_s17 = smov 128   ;;  %s1135_s16 = int_to_ptr.hbm [resolvable:$true] %s1134_s16 }
   0x7   :  { %v32_v8 = vld [vmem:[%s1871_s0] sm:$0xff]  ;;  %v33_v9 = vld [vmem:[%s1871_s0 + $0x8] sm:$0xff]  ;;  %v35_v11 = vld [vmem:[%s1871_s0 + $0x18] sm:$0xff]  ;;  %1244 = vrcp.f32 %v1336_v26  ;;  %s1339_s18 = smov 8  }
   0x8   :  { %69 = vmatpush.msra.mxu0 %v40_v3  ;;  %v1424_v12 = vld [vmem:[%s1877_s6] sm:$0xff] }
   0x9   :  { %v44_v13 = vperm.slane %v1424_v12, 0 }
   0xa   :  { %70 = vmatpush.msra.mxu0 %v39_v4 }
   0xc   :  { %71 = vmatpush.msra.mxu0 %v38_v5 }
   0xd   :  { %v1245_v27 = vpop.eup %1244 }
   0xe   :  { %72 = vmatpush.msra.mxu0 %v37_v6  ;;  %v101_v28 = vmul.f32 32.0, %v1245_v27  ;;  %vm105_vm2 = vweird.f32 %v1245_v27  ;;  %v183_v6 = vperm.slane %v1424_v12, 1 }
  0x10   :  { %73 = vmatpush.msra.mxu0 %v36_v7  ;;  %v102_v29 = vsub.f32 1.0, %v101_v28 }
  0x11   :  { %1146 = vmatmul.msk.f32.vlgmr.msra.gmra.mxu0 %vm45_vm0, %v32_v8 }
  0x12   :  { %v103_v30 = vmul.f32 %v1245_v27, %v102_v29 }
  0x14   :  { %v104_v31 = vadd.f32 %v1245_v27, %v103_v30 }
  0x16   :  { %v1431_v32 = vsel %vm105_vm2, %v1245_v27, %v104_v31 }
  0x19   :  { %1147 = vmatmul.msk.f32.gmra.mxu0 %vm45_vm0, %v33_v9 }
  0x21   :  { %1148 = vmatmul.msk.f32.gmra.mxu0 %vm45_vm0, %v34_v10  ;;  %v188_v10 = vperm.slane %v1424_v12, 2 }
  0x29   :  { %1149 = vmatmul.msk.f32.gmra.mxu0 %vm45_vm0, %v35_v11 }
  0x8e   :  { %v75_v14 = vpop.f32.mrf.mxu0 }
  0x8f   :  { %v76_v15 = vadd.f32 %v75_v14, %v44_v13 }
  0x91   :  { %v88_v16 = vsel %vm87_vm1, %v76_v15, 0.0 }
  0x92   :  { %89 = vadd.xlane.f32.xlu0 %v88_v16 }
  0x96   :  { %v78_v17 = vpop.f32.mrf.mxu0 }
  0x97   :  { %v79_v18 = vadd.f32 %v78_v17, %v44_v13 }
  0x99   :  { %v91_v19 = vsel %vm87_vm1, %v79_v18, 0.0 }
  0x9a   :  { %92 = vadd.xlane.f32.xlu0 %v91_v19 }
  0x9e   :  { %v81_v20 = vpop.f32.mrf.mxu0 }
  0x9f   :  { %v82_v21 = vadd.f32 %v81_v20, %v44_v13 }
  0xa1   :  { %v94_v22 = vsel %vm87_vm1, %v82_v21, 0.0 }
  0xa2   :  { %95 = vadd.xlane.f32.xlu1 %v94_v22 }
  0xa6   :  { %v84_v23 = vpop.f32.mrf.mxu0 }
  0xa7   :  { %v85_v24 = vadd.f32 %v84_v23, %v44_v13 }
  0xa9   :  { %v97_v25 = vsel %vm87_vm1, %v85_v24, 0.0 }
  0xaa   :  { %98 = vadd.xlane.f32.xlu1 %v97_v25 }
 0x105   :  { %v90_v33 = vpop.xlane.xlu0 %89 }
 0x106   :  { %v107_v34 = vmul.f32 %v1431_v32, %v90_v33 }
 0x108   :  { %v111_v35 = vsub.f32 %v76_v15, %v107_v34 }
 0x10a   :  { %v115_v36 = vmul.f32 %v111_v35, %v111_v35 }
 0x10c   :  { %v119_v37 = vsel %vm87_vm1, %v115_v36, 0.0 }
 0x10d   :  { %120 = vadd.xlane.f32.xlu2 %v119_v37  ;;  %v93_v38 = vpop.xlane.xlu0 %92 }
 0x10e   :  { %v108_v39 = vmul.f32 %v1431_v32, %v93_v38 }
 0x110   :  { %v112_v40 = vsub.f32 %v79_v18, %v108_v39 }
 0x112   :  { %v116_v41 = vmul.f32 %v112_v40, %v112_v40 }
 0x114   :  { %v122_v42 = vsel %vm87_vm1, %v116_v41, 0.0 }
 0x115   :  { %v96_v43 = vpop.xlane.xlu1 %95  ;;  %123 = vadd.xlane.f32.xlu2 %v122_v42 }
 0x116   :  { %v109_v44 = vmul.f32 %v1431_v32, %v96_v43 }
 0x118   :  { %v1438_v45 = vsub.f32 %v82_v21, %v109_v44 }
 0x11a   :  { %v117_v46 = vmul.f32 %v1438_v45, %v1438_v45 }
 0x11c   :  { %v125_v47 = vsel %vm87_vm1, %v117_v46, 0.0 }
 0x11d   :  { %v99_v48 = vpop.xlane.xlu1 %98  ;;  %126 = vadd.xlane.f32.xlu0 %v125_v47 }
 0x11e   :  { %v110_v49 = vmul.f32 %v1431_v32, %v99_v48 }
 0x120   :  { %v1444_v50 = vsub.f32 %v85_v24, %v110_v49 }
 0x122   :  { %v118_v51 = vmul.f32 %v1444_v50, %v1444_v50 }
 0x124   :  { %v128_v52 = vsel %vm87_vm1, %v118_v51, 0.0 }
 0x125   :  { %129 = vadd.xlane.f32.xlu1 %v128_v52 }
 0x180   :  { %v121_v53 = vpop.xlane.xlu2 %120 }
 0x181   :  { %v131_v54 = vmul.f32 %v121_v53, %v1431_v32 }
 0x183   :  { %v135_v55 = vadd.f32 1e-05, %v131_v54 }
 0x185   :  { %1246 = vrsqrt.f32 %v135_v55  ;;  %vm145_vm4 = vweird.f32 %v135_v55 }
 0x188   :  { %v124_v56 = vpop.xlane.xlu2 %123 }
 0x189   :  { %v132_v57 = vmul.f32 %v124_v56, %v1431_v32 }
 0x18b   :  { %v1247_v58 = vpop.eup %1246  ;;  %v136_v59 = vadd.f32 1e-05, %v132_v57 }
 0x18c   :  { %v140_v60 = vmul.f32 %v1247_v58, %v135_v55  ;;  %vm146_vm3 = vweird.f32 %v1247_v58 }
 0x18d   :  { %1248 = vrsqrt.f32 %v136_v59  ;;  %vm147_vm5 = vmor %vm145_vm4, %vm146_vm3  ;;  %vm155_vm7 = vweird.f32 %v136_v59 }
 0x18e   :  { %v141_v61 = vmul.f32 %v1247_v58, %v140_v60 }
 0x190   :  { %v142_v62 = vmul.f32 0.5, %v141_v61  ;;  %v127_v63 = vpop.xlane.xlu0 %126 }
 0x191   :  { %v133_v0 = vmul.f32 %v127_v63, %v1431_v32 }
 0x192   :  { %v143_v1 = vsub.f32 1.5, %v142_v62 }
 0x193   :  { %v1249_v2 = vpop.eup %1248  ;;  %v137_v3 = vadd.f32 1e-05, %v133_v0 }
 0x194   :  { %v144_v4 = vmul.f32 %v1247_v58, %v143_v1  ;;  %v150_v5 = vmul.f32 %v1249_v2, %v136_v59  ;;  %vm156_vm6 = vweird.f32 %v1249_v2 }
 0x195   :  { %1250 = vrsqrt.f32 %v137_v3  ;;  %vm157_vm8 = vmor %vm155_vm7, %vm156_vm6  ;;  %vm165_vm10 = vweird.f32 %v137_v3 }
 0x196   :  { %v148_v7 = vsel %vm147_vm5, %v1247_v58, %v144_v4  ;;  %v151_v8 = vmul.f32 %v1249_v2, %v150_v5  ;;  %v294_v5 = vld [vmem:[%s1873_s2 + $0x18] sm:$0xff] }
 0x197   :  { %v179_v9 = vmul.f32 %v148_v7, %v111_v35  ;;  %v1165_v7 = vld [vmem:[%s1873_s2 + $0x98] sm:$0xff]  ;;  %320 = vmatpush.msrb.mxu0 %v294_v5  ;;  %1236 = vmatpush.msra.mxu1 %v294_v5 }
 0x198   :  { %v152_v11 = vmul.f32 0.5, %v151_v8  ;;  %v130_v13 = vpop.xlane.xlu1 %129  ;;  %390 = vmatpush.msra.mxu3 %v1165_v7  ;;  %v293_v8 = vld [vmem:[%s1873_s2 + $0x10] sm:$0xff] }
 0x199   :  { %v134_v14 = vmul.f32 %v130_v13, %v1431_v32  ;;  %v184_v15 = vmul.f32 %v183_v6, %v179_v9  ;;  %v1156_v9 = vld [vmem:[%s1873_s2 + $0x50] sm:$0xff]  ;;  %321 = vmatpush.msrb.mxu0 %v293_v8  ;;  %v1155_v13 = vld [vmem:[%s1873_s2 + $0x48] sm:$0xff]  ;;  %1237 = vmatpush.msra.mxu1 %v293_v8 }
 0x19a   :  { %v153_v16 = vsub.f32 1.5, %v152_v11  ;;  %v292_v11 = vld [vmem:[%s1873_s2 + $0x8] sm:$0xff] }
 0x19b   :  { %v1251_v17 = vpop.eup %1250  ;;  %v138_v18 = vadd.f32 1e-05, %v134_v14  ;;  %v1455_v19 = vadd.f32 %v188_v10, %v184_v15  ;;  %v1163_v14 = vld [vmem:[%s1873_s2 + $0x88] sm:$0xff]  ;;  %322 = vmatpush.msrb.mxu0 %v292_v11  ;;  %v291_v15 = vld [vmem:[%s1873_s2] sm:$0xff]  ;;  %1238 = vmatpush.msra.mxu1 %v292_v11 }
 0x19c   :  { %v154_v20 = vmul.f32 %v1249_v2, %v153_v16  ;;  %v160_v21 = vmul.f32 %v1251_v17, %v137_v3  ;;  %vm166_vm9 = vweird.f32 %v1251_v17  ;;  %v1154_v16 = vld [vmem:[%s1873_s2 + $0x40] sm:$0xff] }
 0x19d   :  { %1252 = vrsqrt.f32 %v138_v18  ;;  %v193_v22 = vsel %vm87_vm1, %v1455_v19, 0.0  ;;  %vm167_vm11 = vmor %vm165_vm10, %vm166_vm9  ;;  %vm175_vm13 = vweird.f32 %v138_v18  ;;  %323 = vmatpush.msrb.mxu0 %v291_v15  ;;  %1239 = vmatpush.msra.mxu1 %v291_v15 }
 0x19e   :  { %v158_v23 = vsel %vm157_vm8, %v1249_v2, %v154_v20  ;;  %v161_v24 = vmul.f32 %v1251_v17, %v160_v21  ;;  %194 = vadd.xlane.f32.xlu2 %v193_v22  ;;  %v1193_v22 = vld [vmem:[%s1873_s2 + $0x78] sm:$0xff] }
 0x19f   :  { %v180_v25 = vmul.f32 %v158_v23, %v112_v40  ;;  %605 = vmatpush.msra.mxu0 %v1193_v22 }
 0x1a0   :  { %v162_v26 = vmul.f32 0.5, %v161_v24  ;;  %v1192_v24 = vld [vmem:[%s1873_s2 + $0x70] sm:$0xff] }
 0x1a1   :  { %v185_v27 = vmul.f32 %v183_v6, %v180_v25  ;;  %606 = vmatpush.msra.mxu0 %v1192_v24 }
 0x1a2   :  { %v163_v28 = vsub.f32 1.5, %v162_v26  ;;  %v1191_v26 = vld [vmem:[%s1873_s2 + $0x68] sm:$0xff] }
 0x1a3   :  { %v1253_v29 = vpop.eup %1252  ;;  %v1459_v30 = vadd.f32 %v188_v10, %v185_v27  ;;  %607 = vmatpush.msra.mxu0 %v1191_v26 }
 0x1a4   :  { %v164_v31 = vmul.f32 %v1251_v17, %v163_v28  ;;  %v170_v33 = vmul.f32 %v1253_v29, %v138_v18  ;;  %vm176_vm12 = vweird.f32 %v1253_v29 }
 0x1a5   :  { %v196_v34 = vsel %vm87_vm1, %v1459_v30, 0.0  ;;  %vm177_vm14 = vmor %vm175_vm13, %vm176_vm12  ;;  %vm411_vm12 = vcmask 130048  }
 0x1a6   :  { %v168_v35 = vsel %vm167_vm11, %v1251_v17, %v164_v31  ;;  %v171_v36 = vmul.f32 %v1253_v29, %v170_v33  ;;  %197 = vadd.xlane.f32.xlu0 %v196_v34  ;;  %v1162_v17 = vld [vmem:[%s1873_s2 + $0x80] sm:$0xff] }
 0x1a7   :  { %v181_v37 = vmul.f32 %v168_v35, %v1438_v45  ;;  %v1190_v31 = vld [vmem:[%s1873_s2 + $0x60] sm:$0xff] }
 0x1a8   :  { %v172_v38 = vmul.f32 0.5, %v171_v36  ;;  %608 = vmatpush.msra.mxu0 %v1190_v31 }
 0x1a9   :  { %v186_v39 = vmul.f32 %v183_v6, %v181_v37 }
 0x1aa   :  { %v173_v40 = vsub.f32 1.5, %v172_v38 }
 0x1ab   :  { %v1464_v41 = vadd.f32 %v188_v10, %v186_v39 }
 0x1ac   :  { %v174_v42 = vmul.f32 %v1253_v29, %v173_v40 }
 0x1ad   :  { %v199_v43 = vsel %vm87_vm1, %v1464_v41, 0.0 }
 0x1ae   :  { %v178_v44 = vsel %vm177_vm14, %v1253_v29, %v174_v42  ;;  %200 = vadd.xlane.f32.xlu1 %v199_v43  ;;  %v1553_v43 = vperm.slane %v1424_v12, 3 }
 0x1af   :  { %v182_v46 = vmul.f32 %v178_v44, %v1444_v50 }
 0x1b1   :  { %v187_v47 = vmul.f32 %v183_v6, %v182_v46  ;;  %v1157_v6 = vld [vmem:[%s1873_s2 + $0x58] sm:$0xff] }
 0x1b2   :  { %355 = vmatpush.msra.mxu2 %v1157_v6 }
 0x1b3   :  { %v1469_v48 = vadd.f32 %v188_v10, %v187_v47  ;;  %v1164_v10 = vld [vmem:[%s1873_s2 + $0x90] sm:$0xff]  ;;  %v1185_v47 = vld [vmem:[%s1873_s2 + $0x38] sm:$0xff] }
 0x1b4   :  { %356 = vmatpush.msra.mxu2 %v1156_v9  ;;  %391 = vmatpush.msra.mxu3 %v1164_v10 }
 0x1b5   :  { %v202_v45 = vsel %vm87_vm1, %v1469_v48, 0.0 }
 0x1b6   :  { %203 = vadd.xlane.f32.xlu2 %v202_v45  ;;  %357 = vmatpush.msra.mxu2 %v1155_v13  ;;  %v1184_v45 = vld [vmem:[%s1873_s2 + $0x30] sm:$0xff] }
 0x1b7   :  { %392 = vmatpush.msra.mxu3 %v1163_v14 }
 0x1b8   :  { %358 = vmatpush.msra.mxu2 %v1154_v16 }
 0x1b9   :  { %393 = vmatpush.msra.mxu3 %v1162_v17 }
 0x1bb   :  { %570 = vmatpush.msrb.mxu3 %v1185_v47 }
 0x1bd   :  { %571 = vmatpush.msrb.mxu3 %v1184_v45 }
 0x211   :  { %v195_v49 = vpop.xlane.xlu2 %194 }
 0x212   :  { %v205_v51 = vmul.f32 %v195_v49, %v1431_v32  ;;  %v286_v49 = vperm.slane %v1424_v12, 4 }
 0x214   :  { %v1475_v52 = vsub.f32 %v1455_v19, %v205_v51 }
 0x216   :  { %v213_v53 = vmul.f32 %v1475_v52, %v1475_v52 }
 0x218   :  { %v217_v54 = vsel %vm87_vm1, %v213_v53, 0.0 }
 0x219   :  { %218 = vadd.xlane.f32.xlu0 %v217_v54  ;;  %v198_v50 = vpop.xlane.xlu0 %197 }
 0x21a   :  { %v206_v55 = vmul.f32 %v198_v50, %v1431_v32  ;;  %v1183_v50 = vld [vmem:[%s1873_s2 + $0x28] sm:$0xff] }
 0x21b   :  { %572 = vmatpush.msrb.mxu3 %v1183_v50 }
 0x21c   :  { %v1482_v56 = vsub.f32 %v1459_v30, %v206_v55 }
 0x21e   :  { %v214_v57 = vmul.f32 %v1482_v56, %v1482_v56 }
 0x220   :  { %v220_v58 = vsel %vm87_vm1, %v214_v57, 0.0 }
 0x221   :  { %v201_v59 = vpop.xlane.xlu1 %200  ;;  %221 = vadd.xlane.f32.xlu1 %v220_v58 }
 0x222   :  { %v207_v60 = vmul.f32 %v201_v59, %v1431_v32 }
 0x224   :  { %v1489_v61 = vsub.f32 %v1464_v41, %v207_v60 }
 0x226   :  { %v215_v62 = vmul.f32 %v1489_v61, %v1489_v61 }
 0x228   :  { %v223_v63 = vsel %vm87_vm1, %v215_v62, 0.0 }
 0x229   :  { %v204_v0 = vpop.xlane.xlu2 %203  ;;  %224 = vadd.xlane.f32.xlu2 %v223_v63 }
 0x22a   :  { %v208_v1 = vmul.f32 %v204_v0, %v1431_v32  ;;  %v1182_v0 = vld [vmem:[%s1873_s2 + $0x20] sm:$0xff] }
 0x22b   :  { %573 = vmatpush.msrb.mxu3 %v1182_v0  ;;  %v1198_v0 = vld [vmem:[%s1873_s2 + $0xa0] sm:$0xff] }
 0x22c   :  { %v1496_v2 = vsub.f32 %v1469_v48, %v208_v1 }
 0x22e   :  { %v216_v3 = vmul.f32 %v1496_v2, %v1496_v2 }
 0x230   :  { %v226_v4 = vsel %vm87_vm1, %v216_v3, 0.0 }
 0x231   :  { %227 = vadd.xlane.f32.xlu0 %v226_v4 }
 0x28c   :  { %v219_v18 = vpop.xlane.xlu0 %218 }
 0x28d   :  { %v229_v20 = vmul.f32 %v219_v18, %v1431_v32 }
 0x28f   :  { %v233_v21 = vadd.f32 1e-05, %v229_v20 }
 0x291   :  { %1254 = vrsqrt.f32 %v233_v21  ;;  %vm243_vm0 = vweird.f32 %v233_v21 }
 0x294   :  { %v222_v23 = vpop.xlane.xlu1 %221 }
 0x295   :  { %v230_v25 = vmul.f32 %v222_v23, %v1431_v32 }
 0x297   :  { %v1255_v27 = vpop.eup %1254  ;;  %v234_v28 = vadd.f32 1e-05, %v230_v25 }
 0x298   :  { %v238_v29 = vmul.f32 %v1255_v27, %v233_v21  ;;  %vm244_vm15 = vweird.f32 %v1255_v27 }
 0x299   :  { %1256 = vrsqrt.f32 %v234_v28  ;;  %vm245_vm2 = vmor %vm243_vm0, %vm244_vm15  ;;  %vm253_vm4 = vweird.f32 %v234_v28 }
 0x29a   :  { %v239_v33 = vmul.f32 %v1255_v27, %v238_v29 }
 0x29c   :  { %v240_v34 = vmul.f32 0.5, %v239_v33  ;;  %v225_v35 = vpop.xlane.xlu2 %224 }
 0x29d   :  { %v231_v36 = vmul.f32 %v225_v35, %v1431_v32  ;;  %v1628_v35 = vld [vmem:[%s1877_s6 + $0x8] sm:$0xff] }
 0x29e   :  { %v241_v37 = vsub.f32 1.5, %v240_v34 }
 0x29f   :  { %v1257_v38 = vpop.eup %1256  ;;  %v235_v39 = vadd.f32 1e-05, %v231_v36  ;;  %v342_v36 = vperm.slane %v1424_v12, 7 }
 0x2a0   :  { %v242_v40 = vmul.f32 %v1255_v27, %v241_v37  ;;  %v248_v42 = vmul.f32 %v1257_v38, %v234_v28  ;;  %vm254_vm3 = vweird.f32 %v1257_v38  ;;  %v377_v37 = vperm.slane %v1628_v35, 1 }
 0x2a1   :  { %1258 = vrsqrt.f32 %v235_v39  ;;  %vm255_vm5 = vmor %vm253_vm4, %vm254_vm3  ;;  %vm263_vm7 = vweird.f32 %v235_v39 }
 0x2a2   :  { %v246_v44 = vsel %vm245_vm2, %v1255_v27, %v242_v40  ;;  %v249_v46 = vmul.f32 %v1257_v38, %v248_v42 }
 0x2a3   :  { %v277_v51 = vmul.f32 %v246_v44, %v1475_v52 }
 0x2a4   :  { %v250_v53 = vmul.f32 0.5, %v249_v46  ;;  %v228_v54 = vpop.xlane.xlu0 %227 }
 0x2a5   :  { %v282_v55 = vmul.f32 %v1553_v43, %v277_v51  ;;  %v232_v57 = vmul.f32 %v228_v54, %v1431_v32  ;;  %v592_v51 = vperm.slane %v1628_v35, 0  ;;  %v295_v54 = vperm.slane %v1424_v12, 5 }
 0x2a6   :  { %v251_v58 = vsub.f32 1.5, %v250_v53 }
 0x2a7   :  { %v1259_v59 = vpop.eup %1258  ;;  %v1568_v60 = vadd.f32 %v286_v49, %v282_v55  ;;  %v236_v62 = vadd.f32 1e-05, %v232_v57  ;;  %v1201_v57 = vld [vmem:[%s1873_s2 + $0xb8] sm:$0xff] }
 0x2a8   :  { %v252_v52 = vmul.f32 %v1257_v38, %v251_v58  ;;  %v258_v63 = vmul.f32 %v1259_v59, %v235_v39  ;;  %vm264_vm6 = vweird.f32 %v1259_v59 }
 0x2a9   :  { %1260 = vrsqrt.f32 %v236_v62  ;;  %1150 = vmatmul.msk.f32.vlgmr.msrb.gmra.mxu0 %vm87_vm1, %v1568_v60  ;;  %1158 = vmatmul.msk.f32.vlgmr.msra.gmra.mxu2 %vm87_vm1, %v1568_v60  ;;  %vm265_vm8 = vmor %vm263_vm7, %vm264_vm6  ;;  %vm273_vm10 = vweird.f32 %v236_v62 }
 0x2aa   :  { %v256_v1 = vsel %vm255_vm5, %v1257_v38, %v252_v52  ;;  %v259_v3 = vmul.f32 %v1259_v59, %v258_v63  ;;  %1166 = vmatmul.msk.f32.vlgmr.msra.gmra.mxu3 %vm87_vm1, %v1568_v60  ;;  %v1199_v52 = vld [vmem:[%s1873_s2 + $0xa8] sm:$0xff] }
 0x2ab   :  { %v278_v4 = vmul.f32 %v256_v1, %v1482_v56 }
 0x2ac   :  { %v260_v5 = vmul.f32 0.5, %v259_v3 }
 0x2ad   :  { %v283_v6 = vmul.f32 %v1553_v43, %v278_v4 }
 0x2ae   :  { %v261_v7 = vsub.f32 1.5, %v260_v5 }
 0x2af   :  { %v1261_v8 = vpop.eup %1260  ;;  %v1581_v9 = vadd.f32 %v286_v49, %v283_v6 }
 0x2b0   :  { %v262_v10 = vmul.f32 %v1259_v59, %v261_v7  ;;  %v268_v11 = vmul.f32 %v1261_v8, %v236_v62  ;;  %vm274_vm9 = vweird.f32 %v1261_v8  ;;  %v1200_v62 = vld [vmem:[%s1873_s2 + $0xb0] sm:$0xff] }
 0x2b1   :  { %1151 = vmatmul.msk.f32.gmra.mxu0 %vm87_vm1, %v1581_v9  ;;  %1159 = vmatmul.msk.f32.gmra.mxu2 %vm87_vm1, %v1581_v9  ;;  %vm275_vm11 = vmor %vm273_vm10, %vm274_vm9 }
 0x2b2   :  { %v266_v56 = vsel %vm265_vm8, %v1259_v59, %v262_v10  ;;  %v269_v13 = vmul.f32 %v1261_v8, %v268_v11  ;;  %1167 = vmatmul.msk.f32.gmra.mxu3 %vm87_vm1, %v1581_v9 }
 0x2b3   :  { %v279_v14 = vmul.f32 %v266_v56, %v1489_v61 }
 0x2b4   :  { %v270_v15 = vmul.f32 0.5, %v269_v13 }
 0x2b5   :  { %v284_v16 = vmul.f32 %v1553_v43, %v279_v14 }
 0x2b6   :  { %v271_v17 = vsub.f32 1.5, %v270_v15  ;;  %v409_v15 = vld [vmem:[%s1878_s7 + $0x10] sm:$0xff] }
 0x2b7   :  { %v1591_v18 = vadd.f32 %v286_v49, %v284_v16 }
 0x2b8   :  { %v272_v20 = vmul.f32 %v1261_v8, %v271_v17 }
 0x2b9   :  { %1152 = vmatmul.msk.f32.vlgmr.msra.gmra.mxu1 %vm87_vm1, %v1591_v18  ;;  %1160 = vmatmul.msk.f32.gmra.mxu2 %vm87_vm1, %v1591_v18 }
 0x2ba   :  { %v276_v21 = vsel %vm275_vm11, %v1261_v8, %v272_v20  ;;  %1168 = vmatmul.msk.f32.gmra.mxu3 %vm87_vm1, %v1591_v18  ;;  %1194 = vmatmul.msk.f32.vlgmr.msra.gmra.mxu0 %vm87_vm1, %v1568_v60  ;;  %v407_v8 = vld [vmem:[%s1878_s7] sm:$0xff]  ;;  %v410_v20 = vld [vmem:[%s1878_s7 + $0x18] sm:$0xff] }
 0x2bb   :  { %v280_v61 = vmul.f32 %v276_v21, %v1496_v2 }
 0x2bd   :  { %v285_v22 = vmul.f32 %v1553_v43, %v280_v61 }
 0x2bf   :  { %v1603_v23 = vadd.f32 %v286_v49, %v285_v22 }
 0x2c1   :  { %1153 = vmatmul.msk.f32.gmra.mxu1 %vm87_vm1, %v1603_v23  ;;  %1161 = vmatmul.msk.f32.gmra.mxu2 %vm87_vm1, %v1603_v23 }
 0x2c2   :  { %1169 = vmatmul.msk.f32.gmra.mxu3 %vm87_vm1, %v1603_v23  ;;  %1195 = vmatmul.msk.f32.gmra.mxu0 %vm87_vm1, %v1581_v9 }
 0x2ca   :  { %1186 = vmatmul.msk.f32.vlgmr.msrb.gmra.mxu3 %vm87_vm1, %v1568_v60  ;;  %1196 = vmatmul.msk.f32.gmra.mxu0 %vm87_vm1, %v1591_v18 }
 0x2d2   :  { %1187 = vmatmul.msk.f32.gmra.mxu3 %vm87_vm1, %v1581_v9  ;;  %1197 = vmatmul.msk.f32.gmra.mxu0 %vm87_vm1, %v1603_v23 }
 0x2da   :  { %1188 = vmatmul.msk.f32.gmra.mxu3 %vm87_vm1, %v1591_v18 }
 0x2e2   :  { %1189 = vmatmul.msk.f32.gmra.mxu3 %vm87_vm1, %v1603_v23 }
 0x326   :  { %v325_v2 = vpop.f32.mrf.mxu0 }
 0x327   :  { %v326_v58 = vadd.f32 %v325_v2, %v295_v54 }
 0x32c   :  { %v360_v24 = vpop.f32.mrf.mxu2 }
 0x32d   :  { %v395_v25 = vpop.f32.mrf.mxu3  ;;  %v361_v55 = vadd.f32 %v360_v24, %v342_v36 }
 0x32e   :  { %v328_v26 = vpop.f32.mrf.mxu0  ;;  %v396_v45 = vadd.f32 %v395_v25, %v377_v37  ;;  %v627_v25 = vperm.slane %v1628_v35, 2 }
 0x32f   :  { %v329_v1 = vadd.f32 %v328_v26, %v295_v54 }
 0x334   :  { %v363_v27 = vpop.f32.mrf.mxu2 }
 0x335   :  { %v398_v28 = vpop.f32.mrf.mxu3  ;;  %v364_v49 = vadd.f32 %v363_v27, %v342_v36 }
 0x336   :  { %v399_v47 = vadd.f32 %v398_v28, %v377_v37  ;;  %v331_v4 = vpop.f32.mrf.mxu1 }
 0x337   :  { %v610_v29 = vpop.f32.mrf.mxu0  ;;  %v332_v5 = vadd.f32 %v331_v4, %v295_v54 }
 0x338   :  { %v611_v3 = vadd.f32 %v610_v29, %v592_v51 }
 0x33c   :  { %v366_v31 = vpop.f32.mrf.mxu2 }
 0x33d   :  { %v401_v33 = vpop.f32.mrf.mxu3  ;;  %v367_v46 = vadd.f32 %v366_v31, %v342_v36 }
 0x33e   :  { %v402_v44 = vadd.f32 %v401_v33, %v377_v37  ;;  %v334_v6 = vpop.f32.mrf.mxu1 }
 0x33f   :  { %v613_v34 = vpop.f32.mrf.mxu0  ;;  %v335_v7 = vadd.f32 %v334_v6, %v295_v54 }
 0x340   :  { %v614_v63 = vadd.f32 %v613_v34, %v592_v51 }
 0x344   :  { %v369_v38 = vpop.f32.mrf.mxu2 }
 0x345   :  { %v370_v39 = vadd.f32 %v369_v38, %v342_v36  ;;  %v404_v40 = vpop.f32.mrf.mxu3 }
 0x346   :  { %v405_v42 = vadd.f32 %v404_v40, %v377_v37 }
 0x347   :  { %v616_v43 = vpop.f32.mrf.mxu0  ;;  %1170 = vmatpush.xpose.msk.msrb.mxu1 %vm411_vm12, %v370_v39 }
 0x348   :  { %533 = vmatpush.msrb.mxu2 %v405_v42  ;;  %v617_v59 = vadd.f32 %v616_v43, %v592_v51 }
 0x34a   :  { %534 = vmatpush.msrb.mxu2 %v402_v44 }
 0x34b   :  { %1171 = vmatpush.xpose.msk.msrb.mxu1 %vm411_vm12, %v367_v46 }
 0x34c   :  { %535 = vmatpush.msrb.mxu2 %v399_v47 }
 0x34e   :  { %536 = vmatpush.msrb.mxu2 %v396_v45 }
 0x34f   :  { %v619_v53 = vpop.f32.mrf.mxu0  ;;  %1172 = vmatpush.xpose.msk.msrb.mxu1 %vm411_vm12, %v364_v49 }
 0x350   :  { %v620_v50 = vadd.f32 %v619_v53, %v592_v51 }
 0x352   :  { %1210 = vmatpush.xpose.msk.msra.mxu2 %vm411_vm12, %v620_v50 }
 0x353   :  { %1173 = vmatpush.xpose.msk.msrb.mxu1 %vm411_vm12, %v361_v55 }
 0x356   :  { %1211 = vmatpush.xpose.msk.msra.mxu2 %vm411_vm12, %v617_v59  ;;  %1174 = vmatmul.msk.f32.vlgmr.msrb.gmra.mxu1 %vm411_vm12, %v326_v58 }
 0x357   :  { %640 = vmatpush.msra.mxu1 %v1201_v57 }
 0x359   :  { %641 = vmatpush.msra.mxu1 %v1200_v62 }
 0x35a   :  { %1212 = vmatpush.xpose.msk.msra.mxu2 %vm411_vm12, %v614_v63 }
 0x35b   :  { %642 = vmatpush.msra.mxu1 %v1199_v52 }
 0x35d   :  { %643 = vmatpush.msra.mxu1 %v1198_v0 }
 0x35e   :  { %1213 = vmatpush.xpose.msk.msra.mxu2 %vm411_vm12, %v611_v3  ;;  %1175 = vmatmul.msk.f32.gmra.mxu1 %vm411_vm12, %v329_v1 }
 0x366   :  { %1176 = vmatmul.msk.f32.gmra.mxu1 %vm411_vm12, %v332_v5 }
 0x36e   :  { %1177 = vmatmul.msk.f32.gmra.mxu1 %vm411_vm12, %v335_v7  ;;  %v575_v7 = vpop.f32.mrf.mxu3 }
 0x376   :  { %1202 = vmatmul.msk.f32.vlgmr.msra.gmra.mxu1 %vm87_vm1, %v1568_v60  ;;  %v408_v60 = vld [vmem:[%s1878_s7 + $0x8] sm:$0xff] }
 0x37e   :  { %1203 = vmatmul.msk.f32.gmra.mxu1 %vm87_vm1, %v1581_v9 }
 0x386   :  { %1204 = vmatmul.msk.f32.gmra.mxu1 %vm87_vm1, %v1591_v18 }
 0x38e   :  { %1205 = vmatmul.msk.f32.gmra.mxu1 %vm87_vm1, %v1603_v23 }
 0x3d3   :  { %v453_v10 = vpop.f32.mrf.mxu1 }
 0x3d4   :  { %v454_v11 = vadd.f32 %v453_v10, %v407_v8  ;;  %v551_v10 = vld [vmem:[%s1874_s3 + $0x8] sm:$0xff] }
 0x3d5   :  { %870 = vmatpush.msrb.mxu1 %v551_v10 }
 0x3d6   :  { %v465_v56 = vsel %vm87_vm1, %v454_v11, -inf }
 0x3d7   :  { %466 = vmax.xlane.f32.xlu1 %v465_v56 }
 0x3db   :  { %v456_v9 = vpop.f32.mrf.mxu1 }
 0x3dc   :  { %v457_v13 = vadd.f32 %v456_v9, %v408_v60  ;;  %v578_v60 = vpop.f32.mrf.mxu3 }
 0x3de   :  { %v468_v14 = vsel %vm87_vm1, %v457_v13, -inf }
 0x3df   :  { %469 = vmax.xlane.f32.xlu2 %v468_v14 }
 0x3e3   :  { %v459_v16 = vpop.f32.mrf.mxu1 }
 0x3e4   :  { %v460_v17 = vadd.f32 %v459_v16, %v409_v15 }
 0x3e6   :  { %v471_v18 = vsel %vm87_vm1, %v460_v17, -inf }
 0x3e7   :  { %472 = vmax.xlane.f32.xlu0 %v471_v18 }
 0x3eb   :  { %v462_v21 = vpop.f32.mrf.mxu1 }
 0x3ec   :  { %v463_v61 = vadd.f32 %v462_v21, %v410_v20 }
 0x3ee   :  { %v474_v22 = vsel %vm87_vm1, %v463_v61, -inf }
 0x3ef   :  { %475 = vmax.xlane.f32.xlu1 %v474_v22 }
 0x3f3   :  { %v645_v23 = vpop.f32.mrf.mxu1 }
 0x3f4   :  { %v646_v31 = vadd.f32 %v645_v23, %v627_v25 }
 0x3fb   :  { %v648_v2 = vpop.f32.mrf.mxu1 }
 0x3fc   :  { %v649_v29 = vadd.f32 %v648_v2, %v627_v25 }
 0x403   :  { %v651_v24 = vpop.f32.mrf.mxu1 }
 0x404   :  { %v652_v28 = vadd.f32 %v651_v24, %v627_v25  ;;  %v1207_v24 = vld [vmem:[%s1878_s7 + $0x28] sm:$0xff] }
 0x40b   :  { %v654_v26 = vpop.f32.mrf.mxu1 }
 0x40c   :  { %v655_v27 = vadd.f32 %v654_v26, %v627_v25 }
 0x40e   :  { %783 = vmatpush.msra.mxu3 %v655_v27 }
 0x410   :  { %784 = vmatpush.msra.mxu3 %v652_v28  ;;  %v1208_v28 = vld [vmem:[%s1878_s7 + $0x30] sm:$0xff] }
 0x412   :  { %785 = vmatpush.msra.mxu3 %v649_v29 }
 0x414   :  { %786 = vmatpush.msra.mxu3 %v646_v31 }
 0x44a   :  { %v467_v33 = vpop.xlane.xlu1 %466 }
 0x44b   :  { %v477_v34 = vsub.f32 %v454_v11, %v467_v33  ;;  %v557_v11 = vperm.slane %v1424_v12, 6 }
 0x44d   :  { %v481_v36 = vmul.f32 1.442695, %v477_v34  ;;  %v576_v56 = vadd.f32 %v575_v7, %v557_v11  ;;  %v579_v9 = vadd.f32 %v578_v60, %v557_v11  ;;  %v1209_v34 = vld [vmem:[%s1878_s7 + $0x38] sm:$0xff] }
 0x44f   :  { %1262 = vpow2.f32 %v481_v36 }
 0x452   :  { %v470_v37 = vpop.xlane.xlu2 %469 }
 0x453   :  { %v478_v38 = vsub.f32 %v457_v13, %v470_v37  ;;  %v581_v13 = vpop.f32.mrf.mxu3 }
 0x454   :  { %v582_v14 = vadd.f32 %v581_v13, %v557_v11 }
 0x455   :  { %v1263_v39 = vpop.eup %1262  ;;  %v483_v40 = vmul.f32 1.442695, %v478_v38 }
 0x456   :  { %v489_v42 = vsel %vm87_vm1, %v1263_v39, 0.0 }
 0x457   :  { %1264 = vpow2.f32 %v483_v40  ;;  %490 = vadd.xlane.f32.xlu2 %v489_v42 }
 0x45a   :  { %v473_v43 = vpop.xlane.xlu0 %472 }
 0x45b   :  { %v479_v44 = vsub.f32 %v460_v17, %v473_v43  ;;  %v584_v15 = vpop.f32.mrf.mxu3  ;;  %v550_v17 = vld [vmem:[%s1874_s3] sm:$0xff] }
 0x45c   :  { %v585_v16 = vadd.f32 %v584_v15, %v557_v11  ;;  %871 = vmatpush.msrb.mxu1 %v550_v17 }
 0x45d   :  { %v1265_v46 = vpop.eup %1264  ;;  %v485_v47 = vmul.f32 1.442695, %v479_v44 }
 0x45e   :  { %v492_v45 = vsel %vm87_vm1, %v1265_v46, 0.0 }
 0x45f   :  { %1266 = vpow2.f32 %v485_v47  ;;  %493 = vadd.xlane.f32.xlu0 %v492_v45 }
 0x462   :  { %v476_v49 = vpop.xlane.xlu1 %475 }
 0x463   :  { %v480_v51 = vsub.f32 %v463_v61, %v476_v49  ;;  %v1206_v61 = vld [vmem:[%s1878_s7 + $0x20] sm:$0xff] }
 0x465   :  { %v1267_v53 = vpop.eup %1266  ;;  %v487_v54 = vmul.f32 1.442695, %v480_v51 }
 0x466   :  { %v495_v50 = vsel %vm87_vm1, %v1267_v53, 0.0 }
 0x467   :  { %1268 = vpow2.f32 %v487_v54  ;;  %496 = vadd.xlane.f32.xlu1 %v495_v50 }
 0x46d   :  { %v1269_v55 = vpop.eup %1268 }
 0x46e   :  { %v498_v57 = vsel %vm87_vm1, %v1269_v55, 0.0 }
 0x46f   :  { %499 = vadd.xlane.f32.xlu2 %v498_v57 }
 0x4ca   :  { %v491_v58 = vpop.xlane.xlu2 %490 }
 0x4cb   :  { %1270 = vrcp.f32 %v491_v58 }
 0x4d1   :  { %v1271_v59 = vpop.eup %1270 }
 0x4d2   :  { %v494_v62 = vpop.xlane.xlu0 %493  ;;  %v505_v52 = vmul.f32 %v1271_v59, %v1263_v39 }
 0x4d3   :  { %1272 = vrcp.f32 %v494_v62 }
 0x4d4   :  { %1178 = vmatmul.msk.f32.vlgmr.msrb.gmra.mxu2 %vm87_vm1, %v505_v52 }
 0x4d9   :  { %v1273_v63 = vpop.eup %1272 }
 0x4da   :  { %v497_v0 = vpop.xlane.xlu1 %496  ;;  %v506_v1 = vmul.f32 %v1273_v63, %v1265_v46 }
 0x4db   :  { %1274 = vrcp.f32 %v497_v0 }
 0x4dc   :  { %1179 = vmatmul.msk.f32.gmra.mxu2 %vm87_vm1, %v506_v1  ;;  %v1223_v1 = vld [vmem:[%s1874_s3 + $0x18] sm:$0xff] }
 0x4dd   :  { %829 = vmatpush.msrb.mxu0 %v1223_v1 }
 0x4e1   :  { %v1275_v3 = vpop.eup %1274 }
 0x4e2   :  { %v500_v4 = vpop.xlane.xlu2 %499  ;;  %v507_v5 = vmul.f32 %v1275_v3, %v1267_v53  ;;  %v1222_v3 = vld [vmem:[%s1874_s3 + $0x10] sm:$0xff] }
 0x4e3   :  { %1276 = vrcp.f32 %v500_v4  ;;  %830 = vmatpush.msrb.mxu0 %v1222_v3  ;;  %v994_v3 = vld [vmem:[%s1875_s4 + $0x10] sm:$0xff] }
 0x4e4   :  { %1180 = vmatmul.msk.f32.gmra.mxu2 %vm87_vm1, %v507_v5 }
 0x4e9   :  { %v1277_v6 = vpop.eup %1276 }
 0x4ea   :  { %v508_v8 = vmul.f32 %v1277_v6, %v1269_v55 }
 0x4ec   :  { %1181 = vmatmul.msk.f32.gmra.mxu2 %vm87_vm1, %v508_v8 }
 0x4f4   :  { %1214 = vmatmul.msk.f32.vlgmr.msra.gmra.mxu2 %vm411_vm12, %v576_v56 }
 0x4fc   :  { %1215 = vmatmul.msk.f32.gmra.mxu2 %vm411_vm12, %v579_v9 }
 0x504   :  { %1216 = vmatmul.msk.f32.gmra.mxu2 %vm411_vm12, %v582_v14 }
 0x50c   :  { %1217 = vmatmul.msk.f32.gmra.mxu2 %vm411_vm12, %v585_v16 }
 0x557   :  { %v538_v12 = vpop.f32.mrf.mxu2 }
 0x558   :  { %1228 = vmatmul.msk.f32.vlgmr.msrb.gmra.mxu1 %vm411_vm12, %v538_v12 }
 0x55f   :  { %v541_v18 = vpop.f32.mrf.mxu2 }
 0x560   :  { %1229 = vmatmul.msk.f32.gmra.mxu1 %vm411_vm12, %v541_v18 }
 0x567   :  { %v544_v20 = vpop.f32.mrf.mxu2 }
 0x568   :  { %1230 = vmatmul.msk.f32.gmra.mxu1 %vm411_vm12, %v544_v20 }
 0x56f   :  { %v547_v21 = vpop.f32.mrf.mxu2 }
 0x570   :  { %1231 = vmatmul.msk.f32.gmra.mxu1 %vm411_vm12, %v547_v21  ;;  %v889_v21 = vperm.slane %v1628_v35, 3 }
 0x577   :  { %v703_v22 = vpop.f32.mrf.mxu2 }
 0x578   :  { %v704_v23 = vadd.f32 %v1206_v61, %v703_v22 }
 0x57a   :  { %v715_v2 = vsel %vm87_vm1, %v704_v23, -inf }
 0x57b   :  { %716 = vmax.xlane.f32.xlu0 %v715_v2 }
 0x57f   :  { %v706_v25 = vpop.f32.mrf.mxu2 }
 0x580   :  { %v707_v26 = vadd.f32 %v1207_v24, %v706_v25 }
 0x582   :  { %v718_v27 = vsel %vm87_vm1, %v707_v26, -inf }
 0x583   :  { %719 = vmax.xlane.f32.xlu1 %v718_v27 }
 0x587   :  { %v709_v29 = vpop.f32.mrf.mxu2 }
 0x588   :  { %v710_v31 = vadd.f32 %v1208_v28, %v709_v29 }
 0x58a   :  { %v721_v33 = vsel %vm87_vm1, %v710_v31, -inf }
 0x58b   :  { %722 = vmax.xlane.f32.xlu2 %v721_v33 }
 0x58f   :  { %v712_v36 = vpop.f32.mrf.mxu2 }
 0x590   :  { %v713_v37 = vadd.f32 %v1209_v34, %v712_v36 }
 0x592   :  { %v724_v38 = vsel %vm87_vm1, %v713_v37, -inf }
 0x593   :  { %725 = vmax.xlane.f32.xlu0 %v724_v38 }
 0x5d5   :  { %v873_v12 = vpop.f32.mrf.mxu1 }
 0x5dd   :  { %v876_v22 = vpop.f32.mrf.mxu1 }
 0x5e5   :  { %v879_v28 = vpop.f32.mrf.mxu1 }
 0x5ee   :  { %v717_v39 = vpop.xlane.xlu0 %716 }
 0x5ef   :  { %v727_v40 = vsub.f32 %v704_v23, %v717_v39 }
 0x5f1   :  { %v731_v42 = vmul.f32 1.442695, %v727_v40 }
 0x5f3   :  { %1278 = vpow2.f32 %v731_v42 }
 0x5f6   :  { %v720_v43 = vpop.xlane.xlu1 %719 }
 0x5f7   :  { %v728_v44 = vsub.f32 %v707_v26, %v720_v43 }
 0x5f9   :  { %v1279_v46 = vpop.eup %1278  ;;  %v733_v47 = vmul.f32 1.442695, %v728_v44 }
 0x5fa   :  { %v739_v45 = vsel %vm87_vm1, %v1279_v46, 0.0 }
 0x5fb   :  { %1280 = vpow2.f32 %v733_v47  ;;  %740 = vadd.xlane.f32.xlu1 %v739_v45 }
 0x5fe   :  { %v723_v49 = vpop.xlane.xlu2 %722 }
 0x5ff   :  { %v729_v51 = vsub.f32 %v710_v31, %v723_v49 }
 0x601   :  { %v1281_v53 = vpop.eup %1280  ;;  %v735_v54 = vmul.f32 1.442695, %v729_v51 }
 0x602   :  { %v742_v50 = vsel %vm87_vm1, %v1281_v53, 0.0 }
 0x603   :  { %1282 = vpow2.f32 %v735_v54  ;;  %743 = vadd.xlane.f32.xlu2 %v742_v50 }
 0x606   :  { %v726_v55 = vpop.xlane.xlu0 %725 }
 0x607   :  { %v730_v57 = vsub.f32 %v713_v37, %v726_v55  ;;  %v882_v37 = vpop.f32.mrf.mxu1 }
 0x609   :  { %v1283_v58 = vpop.eup %1282  ;;  %v737_v59 = vmul.f32 1.442695, %v730_v57 }
 0x60a   :  { %v745_v62 = vsel %vm87_vm1, %v1283_v58, 0.0 }
 0x60b   :  { %1284 = vpow2.f32 %v737_v59  ;;  %746 = vadd.xlane.f32.xlu0 %v745_v62 }
 0x611   :  { %v1285_v52 = vpop.eup %1284 }
 0x612   :  { %v748_v63 = vsel %vm87_vm1, %v1285_v52, 0.0 }
 0x613   :  { %749 = vadd.xlane.f32.xlu1 %v748_v63 }
 0x66e   :  { %v741_v0 = vpop.xlane.xlu1 %740 }
 0x66f   :  { %1286 = vrcp.f32 %v741_v0 }
 0x675   :  { %v1287_v4 = vpop.eup %1286 }
 0x676   :  { %v755_v5 = vmul.f32 %v1287_v4, %v1279_v46  ;;  %v744_v6 = vpop.xlane.xlu2 %743  ;;  %v993_v4 = vld [vmem:[%s1875_s4 + $0x8] sm:$0xff] }
 0x677   :  { %1288 = vrcp.f32 %v744_v6 }
 0x678   :  { %1218 = vmatmul.msk.f32.vlgmr.msra.gmra.mxu3 %vm87_vm1, %v755_v5  ;;  %v992_v5 = vld [vmem:[%s1875_s4] sm:$0xff] }
 0x67d   :  { %v1289_v7 = vpop.eup %1288 }
 0x67e   :  { %v747_v8 = vpop.xlane.xlu0 %746  ;;  %v756_v10 = vmul.f32 %v1289_v7, %v1281_v53 }
 0x67f   :  { %1290 = vrcp.f32 %v747_v8 }
 0x680   :  { %1219 = vmatmul.msk.f32.gmra.mxu3 %vm87_vm1, %v756_v10 }
 0x685   :  { %v1291_v11 = vpop.eup %1290 }
 0x686   :  { %v750_v56 = vpop.xlane.xlu1 %749  ;;  %v757_v60 = vmul.f32 %v1291_v11, %v1283_v58 }
 0x687   :  { %1292 = vrcp.f32 %v750_v56 }
 0x688   :  { %1220 = vmatmul.msk.f32.gmra.mxu3 %vm87_vm1, %v757_v60 }
 0x68d   :  { %v1293_v9 = vpop.eup %1292 }
 0x68e   :  { %v758_v13 = vmul.f32 %v1293_v9, %v1285_v52 }
 0x690   :  { %1221 = vmatmul.msk.f32.gmra.mxu3 %vm87_vm1, %v758_v13 }
 0x6fb   :  { %v788_v14 = vpop.f32.mrf.mxu3 }
 0x6fc   :  { %1224 = vmatmul.msk.f32.vlgmr.msrb.gmra.mxu0 %vm411_vm12, %v788_v14 }
 0x703   :  { %v791_v15 = vpop.f32.mrf.mxu3 }
 0x704   :  { %1225 = vmatmul.msk.f32.gmra.mxu0 %vm411_vm12, %v791_v15 }
 0x70b   :  { %v794_v16 = vpop.f32.mrf.mxu3 }
 0x70c   :  { %1226 = vmatmul.msk.f32.gmra.mxu0 %vm411_vm12, %v794_v16 }
 0x713   :  { %v797_v17 = vpop.f32.mrf.mxu3 }
 0x714   :  { %1227 = vmatmul.msk.f32.gmra.mxu0 %vm411_vm12, %v797_v17 }
 0x779   :  { %v832_v18 = vpop.f32.mrf.mxu0 }
 0x77a   :  { %v874_v20 = vadd.f32 %v873_v12, %v832_v18 }
 0x77c   :  { %v885_v61 = vadd.f32 %v874_v20, %v1455_v19 }
 0x77e   :  { %v1742_v23 = vadd.f32 %v889_v21, %v885_v61  ;;  %v982_v61 = vperm.slane %v1628_v35, 4 }
 0x780   :  { %v894_v2 = vsel %vm87_vm1, %v1742_v23, 0.0 }
 0x781   :  { %895 = vadd.xlane.f32.xlu2 %v894_v2  ;;  %v835_v24 = vpop.f32.mrf.mxu0  ;;  %v1088_v2 = vld [vmem:[%s1876_s5 + $0x70] sm:$0xff] }
 0x782   :  { %v877_v25 = vadd.f32 %v876_v22, %v835_v24  ;;  %v1089_v22 = vld [vmem:[%s1876_s5 + $0x78] sm:$0xff] }
 0x783   :  { %1091 = vmatpush.msrb.mxu3 %v1089_v22 }
 0x784   :  { %v886_v26 = vadd.f32 %v877_v25, %v1459_v30 }
 0x785   :  { %1092 = vmatpush.msrb.mxu3 %v1088_v2 }
 0x786   :  { %v1747_v27 = vadd.f32 %v889_v21, %v886_v26 }
 0x788   :  { %v897_v29 = vsel %vm87_vm1, %v1747_v27, 0.0 }
 0x789   :  { %898 = vadd.xlane.f32.xlu0 %v897_v29  ;;  %v838_v31 = vpop.f32.mrf.mxu0  ;;  %v1087_v29 = vld [vmem:[%s1876_s5 + $0x68] sm:$0xff] }
 0x78a   :  { %v880_v19 = vadd.f32 %v879_v28, %v838_v31  ;;  %v987_v28 = vperm.slane %v1628_v35, 5  ;;  %1093 = vmatpush.msrb.mxu3 %v1087_v29 }
 0x78c   :  { %v887_v33 = vadd.f32 %v880_v19, %v1464_v41  ;;  %v995_v41 = vld [vmem:[%s1875_s4 + $0x18] sm:$0xff] }
 0x78d   :  { %1021 = vmatpush.msrb.mxu2 %v995_v41 }
 0x78e   :  { %v1752_v34 = vadd.f32 %v889_v21, %v887_v33 }
 0x78f   :  { %1022 = vmatpush.msrb.mxu2 %v994_v3 }
 0x790   :  { %v900_v36 = vsel %vm87_vm1, %v1752_v34, 0.0 }
 0x791   :  { %901 = vadd.xlane.f32.xlu1 %v900_v36  ;;  %v841_v38 = vpop.f32.mrf.mxu0  ;;  %1023 = vmatpush.msrb.mxu2 %v993_v4 }
 0x792   :  { %v883_v30 = vadd.f32 %v882_v37, %v841_v38  ;;  %v1086_v37 = vld [vmem:[%s1876_s5 + $0x60] sm:$0xff] }
 0x793   :  { %1024 = vmatpush.msrb.mxu2 %v992_v5  ;;  %1094 = vmatpush.msrb.mxu3 %v1086_v37 }
 0x794   :  { %v888_v39 = vadd.f32 %v883_v30, %v1469_v48 }
 0x796   :  { %v1757_v40 = vadd.f32 %v889_v21, %v888_v39 }
 0x798   :  { %v903_v42 = vsel %vm87_vm1, %v1757_v40, 0.0 }
 0x799   :  { %904 = vadd.xlane.f32.xlu2 %v903_v42 }
 0x7f4   :  { %v896_v43 = vpop.xlane.xlu2 %895 }
 0x7f5   :  { %v906_v44 = vmul.f32 %v896_v43, %v1431_v32 }
 0x7f7   :  { %v910_v46 = vsub.f32 %v1742_v23, %v906_v44 }
 0x7f9   :  { %v914_v47 = vmul.f32 %v910_v46, %v910_v46 }
 0x7fb   :  { %v918_v45 = vsel %vm87_vm1, %v914_v47, 0.0 }
 0x7fc   :  { %919 = vadd.xlane.f32.xlu0 %v918_v45  ;;  %v899_v48 = vpop.xlane.xlu0 %898 }
 0x7fd   :  { %v907_v49 = vmul.f32 %v899_v48, %v1431_v32 }
 0x7ff   :  { %v1769_v51 = vsub.f32 %v1747_v27, %v907_v49 }
 0x801   :  { %v915_v53 = vmul.f32 %v1769_v51, %v1769_v51 }
 0x803   :  { %v921_v54 = vsel %vm87_vm1, %v915_v53, 0.0 }
 0x804   :  { %v902_v50 = vpop.xlane.xlu1 %901  ;;  %922 = vadd.xlane.f32.xlu1 %v921_v54 }
 0x805   :  { %v908_v55 = vmul.f32 %v902_v50, %v1431_v32 }
 0x807   :  { %v1776_v57 = vsub.f32 %v1752_v34, %v908_v55 }
 0x809   :  { %v916_v58 = vmul.f32 %v1776_v57, %v1776_v57 }
 0x80b   :  { %v924_v59 = vsel %vm87_vm1, %v916_v58, 0.0 }
 0x80c   :  { %925 = vadd.xlane.f32.xlu2 %v924_v59  ;;  %v905_v62 = vpop.xlane.xlu2 %904 }
 0x80d   :  { %v909_v52 = vmul.f32 %v905_v62, %v1431_v32 }
 0x80f   :  { %v1783_v63 = vsub.f32 %v1757_v40, %v909_v52 }
 0x811   :  { %v917_v0 = vmul.f32 %v1783_v63, %v1783_v63 }
 0x813   :  { %v927_v1 = vsel %vm87_vm1, %v917_v0, 0.0 }
 0x814   :  { %928 = vadd.xlane.f32.xlu0 %v927_v1 }
 0x86f   :  { %v920_v6 = vpop.xlane.xlu0 %919 }
 0x870   :  { %v930_v7 = vmul.f32 %v920_v6, %v1431_v32 }
 0x872   :  { %v934_v8 = vadd.f32 1e-05, %v930_v7  ;;  %v1084_v7 = vld [vmem:[%s1876_s5 + $0x50] sm:$0xff] }
 0x874   :  { %1294 = vrsqrt.f32 %v934_v8  ;;  %vm944_vm14 = vweird.f32 %v934_v8 }
 0x877   :  { %v923_v10 = vpop.xlane.xlu1 %922 }
 0x878   :  { %v931_v11 = vmul.f32 %v923_v10, %v1431_v32  ;;  %v1081_v10 = vld [vmem:[%s1876_s5 + $0x38] sm:$0xff] }
 0x87a   :  { %v1295_v56 = vpop.eup %1294  ;;  %v935_v60 = vadd.f32 1e-05, %v931_v11  ;;  %v1080_v11 = vld [vmem:[%s1876_s5 + $0x30] sm:$0xff] }
 0x87b   :  { %v939_v9 = vmul.f32 %v1295_v56, %v934_v8  ;;  %vm945_vm13 = vweird.f32 %v1295_v56  ;;  %v1083_v8 = vld [vmem:[%s1876_s5 + $0x48] sm:$0xff] }
 0x87c   :  { %1296 = vrsqrt.f32 %v935_v60  ;;  %vm946_vm15 = vmor %vm944_vm14, %vm945_vm13  ;;  %vm954_vm2 = vweird.f32 %v935_v60 }
 0x87d   :  { %v940_v13 = vmul.f32 %v1295_v56, %v939_v9  ;;  %v1077_v9 = vld [vmem:[%s1876_s5 + $0x18] sm:$0xff] }
 0x87f   :  { %v941_v14 = vmul.f32 0.5, %v940_v13  ;;  %v926_v15 = vpop.xlane.xlu2 %925  ;;  %v1076_v13 = vld [vmem:[%s1876_s5 + $0x10] sm:$0xff] }
 0x880   :  { %v932_v16 = vmul.f32 %v926_v15, %v1431_v32  ;;  %v1074_v15 = vld [vmem:[%s1876_s5] sm:$0xff] }
 0x881   :  { %v942_v17 = vsub.f32 1.5, %v941_v14  ;;  %v1075_v14 = vld [vmem:[%s1876_s5 + $0x8] sm:$0xff] }
 0x882   :  { %v1297_v12 = vpop.eup %1296  ;;  %v936_v18 = vadd.f32 1e-05, %v932_v16  ;;  %v996_v16 = vperm.slane %v1628_v35, 6 }
 0x883   :  { %v943_v20 = vmul.f32 %v1295_v56, %v942_v17  ;;  %v949_v21 = vmul.f32 %v1297_v12, %v935_v60  ;;  %vm955_vm0 = vweird.f32 %v1297_v12  ;;  %v1078_v60 = vld [vmem:[%s1876_s5 + $0x20] sm:$0xff] }
 0x884   :  { %1298 = vrsqrt.f32 %v936_v18  ;;  %vm956_vm3 = vmor %vm954_vm2, %vm955_vm0  ;;  %vm964_vm5 = vweird.f32 %v936_v18 }
 0x885   :  { %v947_v24 = vsel %vm946_vm15, %v1295_v56, %v943_v20  ;;  %v950_v25 = vmul.f32 %v1297_v12, %v949_v21  ;;  %v1079_v56 = vld [vmem:[%s1876_s5 + $0x28] sm:$0xff] }
 0x886   :  { %v978_v26 = vmul.f32 %v947_v24, %v910_v46 }
 0x887   :  { %v951_v31 = vmul.f32 0.5, %v950_v25  ;;  %v929_v19 = vpop.xlane.xlu0 %928 }
 0x888   :  { %v983_v33 = vmul.f32 %v982_v61, %v978_v26  ;;  %v933_v36 = vmul.f32 %v929_v19, %v1431_v32 }
 0x889   :  { %v952_v38 = vsub.f32 1.5, %v951_v31 }
 0x88a   :  { %v1299_v30 = vpop.eup %1298  ;;  %v937_v39 = vadd.f32 1e-05, %v933_v36  ;;  %v988_v42 = vadd.f32 %v987_v28, %v983_v33 }
 0x88b   :  { %v953_v43 = vmul.f32 %v1297_v12, %v952_v38  ;;  %v959_v41 = vmul.f32 %v1299_v30, %v936_v18  ;;  %vm965_vm4 = vweird.f32 %v1299_v30 }
 0x88c   :  { %1300 = vrsqrt.f32 %v937_v39  ;;  %1232 = vmatmul.msk.f32.vlgmr.msrb.gmra.mxu2 %vm87_vm1, %v988_v42  ;;  %vm966_vm6 = vmor %vm964_vm5, %vm965_vm4  ;;  %vm974_vm8 = vweird.f32 %v937_v39 }
 0x88d   :  { %v957_v44 = vsel %vm956_vm3, %v1297_v12, %v953_v43  ;;  %v960_v32 = vmul.f32 %v1299_v30, %v959_v41 }
 0x88e   :  { %v979_v46 = vmul.f32 %v957_v44, %v1769_v51 }
 0x88f   :  { %v961_v47 = vmul.f32 0.5, %v960_v32 }
 0x890   :  { %v984_v45 = vmul.f32 %v982_v61, %v979_v46 }
 0x891   :  { %v962_v48 = vsub.f32 1.5, %v961_v47 }
 0x892   :  { %v1301_v49 = vpop.eup %1300  ;;  %v989_v53 = vadd.f32 %v987_v28, %v984_v45 }
 0x893   :  { %v963_v54 = vmul.f32 %v1299_v30, %v962_v48  ;;  %v969_v50 = vmul.f32 %v1301_v49, %v937_v39  ;;  %vm975_vm7 = vweird.f32 %v1301_v49 }
 0x894   :  { %1233 = vmatmul.msk.f32.gmra.mxu2 %vm87_vm1, %v989_v53  ;;  %vm976_vm9 = vmor %vm974_vm8, %vm975_vm7 }
 0x895   :  { %v967_v55 = vsel %vm966_vm6, %v1299_v30, %v963_v54  ;;  %v970_v58 = vmul.f32 %v1301_v49, %v969_v50 }
 0x896   :  { %v980_v59 = vmul.f32 %v967_v55, %v1776_v57  ;;  %v1085_v57 = vld [vmem:[%s1876_s5 + $0x58] sm:$0xff] }
 0x897   :  { %v971_v62 = vmul.f32 0.5, %v970_v58  ;;  %1095 = vmatpush.msrb.mxu3 %v1085_v57 }
 0x898   :  { %v985_v52 = vmul.f32 %v982_v61, %v980_v59 }
 0x899   :  { %v972_v0 = vsub.f32 1.5, %v971_v62  ;;  %1096 = vmatpush.msrb.mxu3 %v1084_v7 }
 0x89a   :  { %v990_v51 = vadd.f32 %v987_v28, %v985_v52 }
 0x89b   :  { %v973_v1 = vmul.f32 %v1301_v49, %v972_v0  ;;  %1097 = vmatpush.msrb.mxu3 %v1083_v8 }
 0x89c   :  { %1234 = vmatmul.msk.f32.gmra.mxu2 %vm87_vm1, %v990_v51 }
 0x89d   :  { %v977_v3 = vsel %vm976_vm9, %v1301_v49, %v973_v1 }
 0x89e   :  { %v981_v4 = vmul.f32 %v977_v3, %v1783_v63  ;;  %v1082_v63 = vld [vmem:[%s1876_s5 + $0x40] sm:$0xff]  ;;  %s1337_s5 = smov [#allocation2]  }
 0x89f   :  { %1098 = vmatpush.msrb.mxu3 %v1082_v63  ;;  %s1132_s13 = sshll.u32 %s1337_s5, 4  ;;  %s1133_s13 = int_to_ptr.vmem [resolvable:$true] %s1132_s13 }
 0x8a0   :  { %v986_v5 = vmul.f32 %v982_v61, %v981_v4 }
 0x8a1   :  { %1099 = vmatpush.msrb.mxu3 %v1081_v10 }
 0x8a2   :  { %v991_v6 = vadd.f32 %v987_v28, %v986_v5  ;;  %v1090_v5 = vperm.slane %v1628_v35, 7 }
 0x8a3   :  { %1100 = vmatpush.msrb.mxu3 %v1080_v11 }
 0x8a4   :  { %1235 = vmatmul.msk.f32.gmra.mxu2 %vm87_vm1, %v991_v6 }
 0x8a5   :  { %1101 = vmatpush.msrb.mxu3 %v1079_v56 }
 0x8a7   :  { %1102 = vmatpush.msrb.mxu3 %v1078_v60 }
 0x8a9   :  { %1103 = vmatpush.msrb.mxu3 %v1077_v9 }
 0x8ab   :  { %1104 = vmatpush.msrb.mxu3 %v1076_v13 }
 0x8ad   :  { %1105 = vmatpush.msrb.mxu3 %v1075_v14 }
 0x8af   :  { %1106 = vmatpush.msrb.mxu3 %v1074_v15 }
 0x90f   :  { %v1026_v17 = vpop.f32.mrf.mxu2 }
 0x910   :  { %v1027_v12 = vadd.f32 %v1026_v17, %v996_v16 }
 0x912   :  { %v1042_v18 = vmul.f32 0.044715, %v1027_v12  ;;  %v1038_v38 = vmul.f32 0.5, %v1027_v12 }
 0x914   :  { %v1046_v20 = vmul.f32 %v1042_v18, %v1027_v12 }
 0x916   :  { %v1050_v21 = vmul.f32 %v1046_v20, %v1027_v12 }
 0x917   :  { %v1029_v61 = vpop.f32.mrf.mxu2 }
 0x918   :  { %v1030_v22 = vadd.f32 %v1029_v61, %v996_v16  ;;  %v1054_v2 = vadd.f32 %v1050_v21, %v1027_v12 }
 0x91a   :  { %v1058_v24 = vmul.f32 0.7978846, %v1054_v2  ;;  %v1043_v25 = vmul.f32 0.044715, %v1030_v22  ;;  %v1039_v48 = vmul.f32 0.5, %v1030_v22 }
 0x91c   :  { %1302 = vtanh.f32 %v1058_v24  ;;  %v1047_v26 = vmul.f32 %v1043_v25, %v1030_v22 }
 0x91e   :  { %v1051_v28 = vmul.f32 %v1047_v26, %v1030_v22 }
 0x91f   :  { %v1032_v29 = vpop.f32.mrf.mxu2 }
 0x920   :  { %v1033_v31 = vadd.f32 %v1032_v29, %v996_v16  ;;  %v1055_v19 = vadd.f32 %v1051_v28, %v1030_v22 }
 0x922   :  { %v1303_v33 = vpop.eup %1302  ;;  %v1059_v36 = vmul.f32 0.7978846, %v1055_v19  ;;  %v1044_v37 = vmul.f32 0.044715, %v1033_v31  ;;  %v1040_v62 = vmul.f32 0.5, %v1033_v31 }
 0x923   :  { %v1066_v30 = vadd.f32 1.0, %v1303_v33 }
 0x924   :  { %1304 = vtanh.f32 %v1059_v36  ;;  %v1048_v39 = vmul.f32 %v1044_v37, %v1033_v31 }
 0x925   :  { %v1070_v42 = vmul.f32 %v1066_v30, %v1038_v38 }
 0x926   :  { %v1052_v43 = vmul.f32 %v1048_v39, %v1033_v31 }
 0x927   :  { %v1035_v41 = vpop.f32.mrf.mxu2  ;;  %1107 = vmatmul.f32.vlgmr.msrb.gmra.mxu3 %v1070_v42 }
 0x928   :  { %v1036_v44 = vadd.f32 %v1035_v41, %v996_v16  ;;  %v1056_v32 = vadd.f32 %v1052_v43, %v1033_v31 }
 0x92a   :  { %v1305_v46 = vpop.eup %1304  ;;  %v1060_v47 = vmul.f32 0.7978846, %v1056_v32  ;;  %v1045_v45 = vmul.f32 0.044715, %v1036_v44  ;;  %v1041_v1 = vmul.f32 0.5, %v1036_v44 }
 0x92b   :  { %v1067_v49 = vadd.f32 1.0, %v1305_v46 }
 0x92c   :  { %1306 = vtanh.f32 %v1060_v47  ;;  %v1049_v53 = vmul.f32 %v1045_v45, %v1036_v44 }
 0x92d   :  { %v1071_v54 = vmul.f32 %v1067_v49, %v1039_v48 }
 0x92e   :  { %v1053_v50 = vmul.f32 %v1049_v53, %v1036_v44 }
 0x92f   :  { %1110 = vmatmul.f32.gmra.mxu3 %v1071_v54 }
 0x930   :  { %v1057_v55 = vadd.f32 %v1053_v50, %v1036_v44 }
 0x932   :  { %v1307_v58 = vpop.eup %1306  ;;  %v1061_v59 = vmul.f32 0.7978846, %v1057_v55 }
 0x933   :  { %v1068_v52 = vadd.f32 1.0, %v1307_v58 }
 0x934   :  { %1308 = vtanh.f32 %v1061_v59 }
 0x935   :  { %v1072_v0 = vmul.f32 %v1068_v52, %v1040_v62 }
 0x937   :  { %1113 = vmatmul.f32.gmra.mxu3 %v1072_v0 }
 0x93a   :  { %v1309_v51 = vpop.eup %1308 }
 0x93b   :  { %v1069_v3 = vadd.f32 1.0, %v1309_v51 }
 0x93d   :  { %v1073_v4 = vmul.f32 %v1069_v3, %v1041_v1 }
 0x93f   :  { %1116 = vmatmul.f32.gmra.mxu3 %v1073_v4 }
 0x9aa   :  { %v1108_v6 = vpop.f32.mrf.mxu3 }
 0x9ab   :  { %v1109_v57 = vadd.f32 %v1108_v6, %v1090_v5 }
 0x9ad   :  { %v1120_v7 = vadd.f32 %v1109_v57, %v1742_v23 }
 0x9af   :  { %1124 = vst.msk [vmem:[#allocation2] sm:$0xff] %vm87_vm1, %v1120_v7 }
 0x9b2   :  { %v1111_v8 = vpop.f32.mrf.mxu3 }
 0x9b3   :  { %v1112_v63 = vadd.f32 %v1111_v8, %v1090_v5 }
 0x9b5   :  { %v1121_v10 = vadd.f32 %v1112_v63, %v1747_v27 }
 0x9b7   :  { %1125 = vst.msk [vmem:[#allocation2 + $0x8] sm:$0xff] %vm87_vm1, %v1121_v10 }
 0x9ba   :  { %v1114_v11 = vpop.f32.mrf.mxu3 }
 0x9bb   :  { %v1115_v56 = vadd.f32 %v1114_v11, %v1090_v5 }
 0x9bd   :  { %v1122_v60 = vadd.f32 %v1115_v56, %v1752_v34 }
 0x9bf   :  { %1126 = vst.msk [vmem:[#allocation2 + $0x10] sm:$0xff] %vm87_vm1, %v1122_v60 }
 0x9c2   :  { %v1117_v35 = vpop.f32.mrf.mxu3 }
 0x9c3   :  { %v1118_v23 = vadd.f32 %v1117_v35, %v1090_v5 }
 0x9c5   :  { %v1123_v27 = vadd.f32 %v1118_v23, %v1757_v40 }
 0x9c7   :  { %1127 = vst.msk [vmem:[#allocation2 + $0x18] sm:$0xff] %vm87_vm1, %v1123_v27 }
 0x9c8   :  { %1140 = dma.vmem_to_hbm [thread:$0]  %s1133_s13, 512, %s1135_s16, [#allocation3], %s1338_s17, %s1338_s17, %s1339_s18  }
 0x9c9   :  { %1334 = dma.done.wait [#allocation3], 512  }
 0x9ca   :  { %1335 = vsyncadd [#allocation3], 4294966784 }
 0x9cb   :  { %1145 = vsyncpa [#allocation3], 1 }

</bundles_post_ra>
